<compile_context>
chip_gen: v7x
topology: tpu7x:2x2x1
jax: 0.10.0
libtpu: 0.0.40
codegen_flags: <defaults>
</compile_context>

<pallas_src>
import functools

import jax
import jax.numpy as jnp
from jax.experimental import pallas as pl
from jax.experimental.pallas import tpu as pltpu


def _round_up(x, m):
    return (x + m - 1) // m * m


def _conv_gn_silu_kernel(x_ref, w_ref, cp_ref, mg_ref, mgt_ref, maskblk_ref,
                         o_ref, *, taps, s_pad, valid_per_channel,
                         inv_group_count, eps):
    """Fused Conv2d (single K=T*C_in matmul) + GroupNorm('after') + SiLU.

    x_ref:       [bn, C_in, S_in_pad]  zero-padded, flattened input
    w_ref:       [C_out, T*C_in]       im2col weight matrix (tap-major rows)
    cp_ref:      [C_out, 3]            columns: conv bias, GN gamma, GN beta
    mg_ref:      [C_out, G]            one-hot group membership
    mgt_ref:     [G, C_out]            membership, pre-transposed in wrapper
    maskblk_ref: [bn*S_pad, bn]        block-diagonal valid-position mask
    o_ref:       [bn, C_out, S_pad]    normalized + SiLU output, padded flat coords
    """
    bn = o_ref.shape[0]

    bias = cp_ref[:, 0:1]                       # [C_out, 1]
    gamma = cp_ref[:, 1:2]
    beta = cp_ref[:, 2:3]

    # ---- Build the im2col operand in VMEM: stack the kh*kw statically
    # shifted windows along the contraction (sublane) axis and fold the bn
    # samples of this step along the lane axis.  One MXU matmul with K=T*C_in
    # replaces kh*kw K=C_in matmuls plus their VALU accumulations. ----
    cols = []
    for b in range(bn):
        x_full = x_ref[b]                       # [C_in, S_in_pad]
        cols.append(jnp.concatenate(
            [x_full[:, off:off + s_pad] for off in taps], axis=0))
    im2col = cols[0] if bn == 1 else jnp.concatenate(cols, axis=1)

    acc = jnp.dot(w_ref[...], im2col,
                  preferred_element_type=jnp.float32)        # [C_out, bn*S_pad]

    # ---- GroupNorm statistics over valid positions only.  Masked per-channel
    # sum / sum-of-squares are MXU matmuls against the block-diagonal mask
    # (one column per sample); the conv bias is folded analytically on
    # [C_out, bn] vectors so the big tile never sees a bias add. ----
    maskblk = maskblk_ref[...]                               # [bn*S_pad, bn]
    ch_sum = jnp.dot(acc, maskblk, preferred_element_type=jnp.float32)
    ch_sq = jnp.dot(acc * acc, maskblk, preferred_element_type=jnp.float32)
    ch_sum_y = ch_sum + bias * valid_per_channel             # sum(u + b)
    ch_sq_y = ch_sq + 2.0 * bias * ch_sum + bias * bias * valid_per_channel

    ch_stats = jnp.concatenate([ch_sum_y, ch_sq_y], axis=1)  # [C_out, 2*bn]
    grp = jnp.dot(mgt_ref[...], ch_stats,
                  preferred_element_type=jnp.float32)        # [G, 2*bn]
    mean_g = grp[:, :bn] * inv_group_count
    var_g = jnp.maximum(grp[:, bn:] * inv_group_count - mean_g * mean_g, 0.0)
    rstd_g = jax.lax.rsqrt(var_g + eps)

    back = jnp.dot(mg_ref[...], jnp.concatenate([mean_g, rstd_g], axis=1),
                   preferred_element_type=jnp.float32)       # [C_out, 2*bn]
    mean_c = back[:, :bn]
    rstd_c = back[:, bn:]

    # Fold GN affine + conv bias into a per-(channel, sample) scale/shift.
    scale = gamma * rstd_c                                   # [C_out, bn]
    shift = beta + scale * (bias - mean_c)

    # ---- Epilogue: z = scale*u + shift, then SiLU (sigmoid via tanh on the
    # EUP).  S_pad is a multiple of 128, so the per-sample lane slices are
    # aligned and every store is a lane-dense unmasked vst. ----
    for b in range(bn):
        zb = (scale[:, b:b + 1] * acc[:, b * s_pad:(b + 1) * s_pad]
              + shift[:, b:b + 1])
        o_ref[b] = zb * (0.5 * jnp.tanh(0.5 * zb) + 0.5)


def conv_and_act(x, weight, bias, gamma, beta, *, stride, padding, groups,
                 eps=1e-6, samples_per_step=1):
    """x: [N, C_in, H, W] (NCHW).  weight: [C_out, C_in, kh, kw] (OIHW)."""
    N, C_in, H, W = x.shape
    C_out, _, kh, kw = weight.shape
    G = groups
    assert C_out % G == 0
    s = stride
    Hp, Wp = H + 2 * padding, W + 2 * padding
    Hout = (Hp - kh) // s + 1
    Wout = (Wp - kw) // s + 1
    S = Hp * Wp                                   # flattened padded spatial
    S_pad = _round_up(S, 128)                     # lane-dense output width
    max_off = (kh - 1) * Wp + (kw - 1)
    S_in_pad = _round_up(S_pad + max_off, 128)    # every tap window fits
    Pv = Hout * Wout                              # valid positions per channel
    T = kh * kw
    bn = samples_per_step
    assert N % bn == 0

    # ---- cheap layout glue in plain JAX (no HBM im2col; input read once). ----
    xp = jnp.pad(x.astype(jnp.float32),
                 ((0, 0), (0, 0), (padding, padding), (padding, padding)))
    x_flat = jnp.pad(xp.reshape(N, C_in, S), ((0, 0), (0, 0), (0, S_in_pad - S)))

    # [C_out, T*C_in], tap-major / channel-minor to match the in-kernel
    # im2col row order.
    w2 = weight.astype(jnp.float32).transpose(0, 2, 3, 1).reshape(C_out, T * C_in)
    cparams = jnp.stack([bias, gamma, beta], axis=1).astype(jnp.float32)  # [C_out,3]

    mg = jax.nn.one_hot(jnp.arange(C_out) // (C_out // G), G, dtype=jnp.float32)
    mgt = mg.T                                     # pre-transposed (no in-kernel XLU)

    rows = jnp.arange(Hp)
    cols = jnp.arange(Wp)
    rvalid = (rows % s == 0) & (rows < Hout * s)
    cvalid = (cols % s == 0) & (cols < Wout * s)
    mask = (rvalid[:, None] & cvalid[None, :]).astype(jnp.float32).reshape(S)
    mask = jnp.pad(mask, (0, S_pad - S))
    # Block-diagonal [bn*S_pad, bn]: column b holds the mask for sample b.
    maskblk = jnp.kron(jnp.eye(bn, dtype=jnp.float32), mask[:, None])

    taps = tuple(i * Wp + j for i in range(kh) for j in range(kw))

    kernel = functools.partial(
        _conv_gn_silu_kernel,
        taps=taps,
        s_pad=S_pad,
        valid_per_channel=float(Pv),
        inv_group_count=1.0 / float((C_out // G) * Pv),
        eps=float(eps),
    )

    out_flat = pl.pallas_call(
        kernel,
        out_shape=jax.ShapeDtypeStruct((N, C_out, S_pad), jnp.float32),
        grid_spec=pltpu.PrefetchScalarGridSpec(
            num_scalar_prefetch=0,
            grid=(N // bn,),
            in_specs=[
                pl.BlockSpec((bn, C_in, S_in_pad), lambda n: (n, 0, 0)),   # input
                pl.BlockSpec((C_out, T * C_in), lambda n: (0, 0)),         # im2col weights
                pl.BlockSpec((C_out, 3), lambda n: (0, 0)),                # bias/gamma/beta
                pl.BlockSpec((C_out, G), lambda n: (0, 0)),                # membership
                pl.BlockSpec((G, C_out), lambda n: (0, 0)),                # membership^T
                pl.BlockSpec((bn * S_pad, bn), lambda n: (0, 0)),          # block-diag mask
            ],
            out_specs=pl.BlockSpec((bn, C_out, S_pad), lambda n: (n, 0, 0)),
        ),
        compiler_params=pltpu.CompilerParams(
            dimension_semantics=("parallel",),
            vmem_limit_bytes=32 * 1024 * 1024,
        ),
    )(x_flat, w2, cparams, mg, mgt, maskblk)

    out = out_flat[:, :, :S].reshape(N, C_out, Hp, Wp)
    return out[:, :, :Hout * s:s, :Wout * s:s]


def _reference(x, weight, bias, gamma, beta, *, stride, padding, groups,
               eps=1e-6):
    y = jax.lax.conv_general_dilated(
        x, weight, window_strides=(stride, stride),
        padding=((padding, padding), (padding, padding)),
        dimension_numbers=('NCHW', 'OIHW', 'NCHW'))
    y = y + bias.reshape(1, -1, 1, 1)
    N, C, H, W = y.shape
    yg = y.reshape(N, groups, C // groups, H, W)
    mean = yg.mean(axis=(2, 3, 4), keepdims=True)
    var = yg.var(axis=(2, 3, 4), keepdims=True)
    yn = ((yg - mean) / jnp.sqrt(var + eps)).reshape(N, C, H, W)
    z = gamma.reshape(1, -1, 1, 1) * yn + beta.reshape(1, -1, 1, 1)
    return z * jax.nn.sigmoid(z)


if __name__ == "__main__":
    # Module config (GroupNorm with groups=16 requires out_channels % 16 == 0).
    N, C_in, H, W = 2, 16, 16, 16
    C_out, ksz, stride, padding, groups = 32, 3, 1, 1, 16

    key = jax.random.PRNGKey(0)
    k1, k2, k3, k4, k5 = jax.random.split(key, 5)
    x = jax.random.normal(k1, (N, C_in, H, W), dtype=jnp.float32)
    weight = 0.1 * jax.random.normal(k2, (C_out, C_in, ksz, ksz), jnp.float32)
    bias = 0.1 * jax.random.normal(k3, (C_out,), jnp.float32)
    gamma = 1.0 + 0.1 * jax.random.normal(k4, (C_out,), jnp.float32)
    beta = 0.1 * jax.random.normal(k5, (C_out,), jnp.float32)

    out = conv_and_act(x, weight, bias, gamma, beta,
                       stride=stride, padding=padding, groups=groups)
    out = jax.block_until_ready(out)

    ref = _reference(x, weight, bias, gamma, beta,
                     stride=stride, padding=padding, groups=groups)
    err = float(jnp.max(jnp.abs(out - ref)))
    assert err < 1e-3, f"max abs err too large: {err}"
    print("KERNEL_OK")
</pallas_src>

<mosaic_0001>
module attributes {stable_mosaic.version = 11 : i64} {
  func.func @_conv_gn_silu_kernel(%arg0: i32, %arg1: memref<1x16x512xf32, #tpu.memory_space<vmem>>, %arg2: memref<32x144xf32, #tpu.memory_space<vmem>>, %arg3: memref<32x3xf32, #tpu.memory_space<vmem>>, %arg4: memref<32x16xf32, #tpu.memory_space<vmem>>, %arg5: memref<16x32xf32, #tpu.memory_space<vmem>>, %arg6: memref<384x1xf32, #tpu.memory_space<vmem>>, %arg7: memref<1x32x384xf32, #tpu.memory_space<vmem>>) attributes {dimension_semantics = [#tpu.dimension_semantics<parallel>], iteration_bounds = array<i64: 2>, scalar_prefetch = 0 : i64, scratch_operands = 0 : i64, tpu.core_type = #tpu.core_type<tc>, window_params = [{transform_indices = @transform_0, window_bounds = array<i64: 1, 16, 512>}, {pipeline_mode = #tpu.pipeline_mode<synchronous>, transform_indices = @transform_1, window_bounds = array<i64: 32, 144>}, {pipeline_mode = #tpu.pipeline_mode<synchronous>, transform_indices = @transform_2, window_bounds = array<i64: 32, 3>}, {pipeline_mode = #tpu.pipeline_mode<synchronous>, transform_indices = @transform_3, window_bounds = array<i64: 32, 16>}, {pipeline_mode = #tpu.pipeline_mode<synchronous>, transform_indices = @transform_4, window_bounds = array<i64: 16, 32>}, {pipeline_mode = #tpu.pipeline_mode<synchronous>, transform_indices = @transform_5, window_bounds = array<i64: 384, 1>}, {transform_indices = @transform_6, window_bounds = array<i64: 1, 32, 384>}]} {
    %c0 = arith.constant 0 : index
    %c0_0 = arith.constant 0 : index
    %0 = vector.load %arg3[%c0, %c0_0] : memref<32x3xf32, #tpu.memory_space<vmem>>, vector<32x1xf32>
    %c0_1 = arith.constant 0 : index
    %c1 = arith.constant 1 : index
    %1 = vector.load %arg3[%c0_1, %c1] : memref<32x3xf32, #tpu.memory_space<vmem>>, vector<32x1xf32>
    %c0_2 = arith.constant 0 : index
    %c2 = arith.constant 2 : index
    %2 = vector.load %arg3[%c0_2, %c2] : memref<32x3xf32, #tpu.memory_space<vmem>>, vector<32x1xf32>
    %c0_3 = arith.constant 0 : index
    %c0_4 = arith.constant 0 : index
    %c0_5 = arith.constant 0 : index
    %3 = vector.load %arg1[%c0_3, %c0_4, %c0_5] : memref<1x16x512xf32, #tpu.memory_space<vmem>>, vector<1x16x512xf32>
    %4 = vector.shape_cast %3 : vector<1x16x512xf32> to vector<16x512xf32>
    %5 = vector.extract_strided_slice %4 {offsets = [0, 0], sizes = [16, 384], strides = [1, 1]} : vector<16x512xf32> to vector<16x384xf32>
    %6 = vector.extract_strided_slice %4 {offsets = [0, 1], sizes = [16, 384], strides = [1, 1]} : vector<16x512xf32> to vector<16x384xf32>
    %7 = vector.extract_strided_slice %4 {offsets = [0, 2], sizes = [16, 384], strides = [1, 1]} : vector<16x512xf32> to vector<16x384xf32>
    %8 = vector.extract_strided_slice %4 {offsets = [0, 18], sizes = [16, 384], strides = [1, 1]} : vector<16x512xf32> to vector<16x384xf32>
    %9 = vector.extract_strided_slice %4 {offsets = [0, 19], sizes = [16, 384], strides = [1, 1]} : vector<16x512xf32> to vector<16x384xf32>
    %10 = vector.extract_strided_slice %4 {offsets = [0, 20], sizes = [16, 384], strides = [1, 1]} : vector<16x512xf32> to vector<16x384xf32>
    %11 = vector.extract_strided_slice %4 {offsets = [0, 36], sizes = [16, 384], strides = [1, 1]} : vector<16x512xf32> to vector<16x384xf32>
    %12 = vector.extract_strided_slice %4 {offsets = [0, 37], sizes = [16, 384], strides = [1, 1]} : vector<16x512xf32> to vector<16x384xf32>
    %13 = vector.extract_strided_slice %4 {offsets = [0, 38], sizes = [16, 384], strides = [1, 1]} : vector<16x512xf32> to vector<16x384xf32>
    %14 = tpu.concatenate %5, %6, %7, %8, %9, %10, %11, %12, %13 in 0 : vector<16x384xf32>, vector<16x384xf32>, vector<16x384xf32>, vector<16x384xf32>, vector<16x384xf32>, vector<16x384xf32>, vector<16x384xf32>, vector<16x384xf32>, vector<16x384xf32> -> vector<144x384xf32>
    %c0_6 = arith.constant 0 : index
    %c0_7 = arith.constant 0 : index
    %15 = vector.load %arg2[%c0_6, %c0_7] : memref<32x144xf32, #tpu.memory_space<vmem>>, vector<32x144xf32>
    %cst = arith.constant dense<0.000000e+00> : vector<32x384xf32>
    %16 = tpu.matmul %15, %14, %cst {dimension_numbers = #tpu.dot_dimension_numbers<[1], [0], [0], [1], [0, 0, 1, 1], [], []>} : vector<32x144xf32>, vector<144x384xf32>, vector<32x384xf32> -> vector<32x384xf32>
    %c0_8 = arith.constant 0 : index
    %c0_9 = arith.constant 0 : index
    %17 = vector.load %arg6[%c0_8, %c0_9] : memref<384x1xf32, #tpu.memory_space<vmem>>, vector<384x1xf32>
    %cst_10 = arith.constant dense<0.000000e+00> : vector<32x1xf32>
    %18 = tpu.matmul %16, %17, %cst_10 {dimension_numbers = #tpu.dot_dimension_numbers<[1], [0], [0], [1], [0, 0, 1, 1], [], []>} : vector<32x384xf32>, vector<384x1xf32>, vector<32x1xf32> -> vector<32x1xf32>
    %19 = arith.mulf %16, %16 : vector<32x384xf32>
    %cst_11 = arith.constant dense<0.000000e+00> : vector<32x1xf32>
    %20 = tpu.matmul %19, %17, %cst_11 {dimension_numbers = #tpu.dot_dimension_numbers<[1], [0], [0], [1], [0, 0, 1, 1], [], []>} : vector<32x384xf32>, vector<384x1xf32>, vector<32x1xf32> -> vector<32x1xf32>
    %cst_12 = arith.constant 2.560000e+02 : f32
    %21 = vector.broadcast %cst_12 : f32 to vector<32x1xf32>
    %22 = arith.mulf %0, %21 : vector<32x1xf32>
    %23 = arith.addf %18, %22 : vector<32x1xf32>
    %cst_13 = arith.constant 2.000000e+00 : f32
    %24 = vector.broadcast %cst_13 : f32 to vector<32x1xf32>
    %25 = arith.mulf %24, %0 : vector<32x1xf32>
    %26 = arith.mulf %25, %18 : vector<32x1xf32>
    %27 = arith.addf %20, %26 : vector<32x1xf32>
    %28 = arith.mulf %0, %0 : vector<32x1xf32>
    %cst_14 = arith.constant 2.560000e+02 : f32
    %29 = vector.broadcast %cst_14 : f32 to vector<32x1xf32>
    %30 = arith.mulf %28, %29 : vector<32x1xf32>
    %31 = arith.addf %27, %30 : vector<32x1xf32>
    %32 = tpu.concatenate %23, %31 in 1 : vector<32x1xf32>, vector<32x1xf32> -> vector<32x2xf32>
    %c0_15 = arith.constant 0 : index
    %c0_16 = arith.constant 0 : index
    %33 = vector.load %arg5[%c0_15, %c0_16] : memref<16x32xf32, #tpu.memory_space<vmem>>, vector<16x32xf32>
    %cst_17 = arith.constant dense<0.000000e+00> : vector<16x2xf32>
    %34 = tpu.matmul %33, %32, %cst_17 {dimension_numbers = #tpu.dot_dimension_numbers<[1], [0], [0], [1], [0, 0, 1, 1], [], []>} : vector<16x32xf32>, vector<32x2xf32>, vector<16x2xf32> -> vector<16x2xf32>
    %35 = vector.extract_strided_slice %34 {offsets = [0, 0], sizes = [16, 1], strides = [1, 1]} : vector<16x2xf32> to vector<16x1xf32>
    %cst_18 = arith.constant 0.001953125 : f32
    %36 = vector.broadcast %cst_18 : f32 to vector<16x1xf32>
    %37 = arith.mulf %35, %36 : vector<16x1xf32>
    %38 = vector.extract_strided_slice %34 {offsets = [0, 1], sizes = [16, 1], strides = [1, 1]} : vector<16x2xf32> to vector<16x1xf32>
    %cst_19 = arith.constant 0.001953125 : f32
    %39 = vector.broadcast %cst_19 : f32 to vector<16x1xf32>
    %40 = arith.mulf %38, %39 : vector<16x1xf32>
    %41 = arith.mulf %37, %37 : vector<16x1xf32>
    %42 = arith.subf %40, %41 : vector<16x1xf32>
    %cst_20 = arith.constant 0.000000e+00 : f32
    %43 = vector.broadcast %cst_20 : f32 to vector<16x1xf32>
    %44 = arith.maximumf %42, %43 : vector<16x1xf32>
    %cst_21 = arith.constant 9.99999997E-7 : f32
    %45 = vector.broadcast %cst_21 : f32 to vector<16x1xf32>
    %46 = arith.addf %44, %45 : vector<16x1xf32>
    %47 = math.rsqrt %46 : vector<16x1xf32>
    %c0_22 = arith.constant 0 : index
    %c0_23 = arith.constant 0 : index
    %48 = vector.load %arg4[%c0_22, %c0_23] : memref<32x16xf32, #tpu.memory_space<vmem>>, vector<32x16xf32>
    %49 = tpu.concatenate %37, %47 in 1 : vector<16x1xf32>, vector<16x1xf32> -> vector<16x2xf32>
    %cst_24 = arith.constant dense<0.000000e+00> : vector<32x2xf32>
    %50 = tpu.matmul %48, %49, %cst_24 {dimension_numbers = #tpu.dot_dimension_numbers<[1], [0], [0], [1], [0, 0, 1, 1], [], []>} : vector<32x16xf32>, vector<16x2xf32>, vector<32x2xf32> -> vector<32x2xf32>
    %51 = vector.extract_strided_slice %50 {offsets = [0, 0], sizes = [32, 1], strides = [1, 1]} : vector<32x2xf32> to vector<32x1xf32>
    %52 = vector.extract_strided_slice %50 {offsets = [0, 1], sizes = [32, 1], strides = [1, 1]} : vector<32x2xf32> to vector<32x1xf32>
    %53 = arith.mulf %1, %52 : vector<32x1xf32>
    %54 = arith.subf %0, %51 : vector<32x1xf32>
    %55 = arith.mulf %53, %54 : vector<32x1xf32>
    %56 = arith.addf %2, %55 : vector<32x1xf32>
    %57 = vector.broadcast %53 : vector<32x1xf32> to vector<32x384xf32>
    %58 = arith.mulf %57, %16 : vector<32x384xf32>
    %59 = vector.broadcast %56 : vector<32x1xf32> to vector<32x384xf32>
    %60 = arith.addf %58, %59 : vector<32x384xf32>
    %cst_25 = arith.constant 5.000000e-01 : f32
    %61 = vector.broadcast %cst_25 : f32 to vector<32x384xf32>
    %62 = arith.mulf %61, %60 : vector<32x384xf32>
    %63 = math.tanh %62 : vector<32x384xf32>
    %cst_26 = arith.constant 5.000000e-01 : f32
    %64 = vector.broadcast %cst_26 : f32 to vector<32x384xf32>
    %65 = arith.mulf %64, %63 : vector<32x384xf32>
    %cst_27 = arith.constant 5.000000e-01 : f32
    %66 = vector.broadcast %cst_27 : f32 to vector<32x384xf32>
    %67 = arith.addf %65, %66 : vector<32x384xf32>
    %68 = arith.mulf %60, %67 : vector<32x384xf32>
    %c0_28 = arith.constant 0 : index
    %c0_29 = arith.constant 0 : index
    %c0_30 = arith.constant 0 : index
    %69 = vector.load %arg7[%c0_28, %c0_29, %c0_30] : memref<1x32x384xf32, #tpu.memory_space<vmem>>, vector<1x32x384xf32>
    %70 = vector.shape_cast %69 : vector<1x32x384xf32> to vector<32x384xf32>
    %71 = vector.shape_cast %68 : vector<32x384xf32> to vector<1x32x384xf32>
    tpu.vector_store %arg7[%c0_28, %c0_29, %c0_30], %71 {strides = array<i32>} : memref<1x32x384xf32, #tpu.memory_space<vmem>>, vector<1x32x384xf32>,
    return
  }
  func.func @transform_0(%arg0: i32) -> (i32, i32, i32) {
    %c0_i32 = arith.constant 0 : i32
    %c0_i32_0 = arith.constant 0 : i32
    %c0_i32_1 = arith.constant 0 : i32
    return %arg0, %c0_i32, %c0_i32_0 : i32, i32, i32
  }
  func.func @transform_1(%arg0: i32) -> (i32, i32) {
    %c0_i32 = arith.constant 0 : i32
    %c0_i32_0 = arith.constant 0 : i32
    %c0_i32_1 = arith.constant 0 : i32
    return %c0_i32, %c0_i32_0 : i32, i32
  }
  func.func @transform_2(%arg0: i32) -> (i32, i32) {
    %c0_i32 = arith.constant 0 : i32
    %c0_i32_0 = arith.constant 0 : i32
    %c0_i32_1 = arith.constant 0 : i32
    return %c0_i32, %c0_i32_0 : i32, i32
  }
  func.func @transform_3(%arg0: i32) -> (i32, i32) {
    %c0_i32 = arith.constant 0 : i32
    %c0_i32_0 = arith.constant 0 : i32
    %c0_i32_1 = arith.constant 0 : i32
    return %c0_i32, %c0_i32_0 : i32, i32
  }
  func.func @transform_4(%arg0: i32) -> (i32, i32) {
    %c0_i32 = arith.constant 0 : i32
    %c0_i32_0 = arith.constant 0 : i32
    %c0_i32_1 = arith.constant 0 : i32
    return %c0_i32, %c0_i32_0 : i32, i32
  }
  func.func @transform_5(%arg0: i32) -> (i32, i32) {
    %c0_i32 = arith.constant 0 : i32
    %c0_i32_0 = arith.constant 0 : i32
    %c0_i32_1 = arith.constant 0 : i32
    return %c0_i32, %c0_i32_0 : i32, i32
  }
  func.func @transform_6(%arg0: i32) -> (i32, i32, i32) {
    %c0_i32 = arith.constant 0 : i32
    %c0_i32_0 = arith.constant 0 : i32
    %c0_i32_1 = arith.constant 0 : i32
    return %arg0, %c0_i32, %c0_i32_0 : i32, i32, i32
  }
}

</mosaic_0001>

<bundles_post_ra>
// kernel: tpu_custom_call.1
= control target key start
LH: loop header
LB: loop body
LE: loop exit
PB: predicated region body
PF: predicated region fallthrough
CT: control target
= control target key end

     0   :  { %11 = vsyncpa [#allocation3], 0  ;;  %s3233_s0 = inlined_call_operand.vmem [shape: f32[2,16,512], index: 0, kind: input, shape index: {}]   ;;  %s3234_s1 = inlined_call_operand.vmem [shape: f32[32,144], index: 1, kind: input, shape index: {}]   ;;  %s3235_s2 = inlined_call_operand.vmem [shape: f32[32,3], index: 2, kind: input, shape index: {}]   ;;  %s3236_s3 = inlined_call_operand.vmem [shape: f32[32,16], index: 3, kind: input, shape index: {}]   ;;  %s3237_s4 = inlined_call_operand.vmem [shape: f32[16,32], index: 4, kind: input, shape index: {}]   ;;  %s3238_s5 = inlined_call_operand.vmem [shape: f32[384,1], index: 5, kind: input, shape index: {}]   ;;  %s3239_s6 = inlined_call_operand.hbm [shape: f32[2,32,384], index: 6, kind: output, shape index: {}]  }
   0x1   :  { %13 = vsyncpa [#allocation3 + $0x1], 0  ;;  %s2448_s21 = smov 0   ;;  %s2450_s22 = smov 0  }
   0x2   :  { %s2452_s23 = smov 0   ;;  %s2454_s24 = smov 0  }
   0x3 LB: > { %s2469_s25 = sadd.s32 4294967295, %s2396_s24   ;;  %s1613_s26 = sadd.s32 4294967294, %s2396_s24   ;;  %s2396_s24 = sphi %s2454_s24, %s3245_s24   ;;  %s2392_s23 = sphi %s2452_s23, %s3244_s23   ;;  %s2388_s22 = sphi %s2450_s22, %s3243_s22   ;;  %s2384_s21 = sphi %s2448_s21, %s3242_s21  }
   0x4   : > { %s2473_s27 = sadd.s32 1, %s2396_s24   ;;  %s157_s28 = sadd.s32 1, %s2392_s23 }
   0x5   : > { %s154_s29 = ssub.s32 %s2396_s24, %s2473_s27  ;;  %p167_p0 = scmp.ne.s32.totalorder %s2392_s23, %s2388_s22 }
   0x6   : > { %p155_p1 = scmp.eq.s32.totalorder %s154_s29, 0  ;;  %p168_p2 = scmp.eq.s32.totalorder %s2469_s25, 1 }
   0x7   : > { %p173_p3 = scmp.ne.s32.totalorder %s2388_s22, %s2384_s21  ;;  %p174_p4 = scmp.eq.s32.totalorder %s1613_s26, 1 }
   0x8   : > { %s2484_s30 = scalar_select %p155_p1, %s2392_s23, %s157_s28  }
   0x9   : > { %p2486_p5 = por %p168_p2, %p167_p0  ;;  %p2490_p6 = por %p174_p4, %p173_p3 }
   0xa   : > { %p1616_p7 = scmp.ge.s32.totalorder %s2396_s24, 1  ;;  %p215_p8 = scmp.lt.s32.totalorder %s2396_s24, 3 }
   0xc   : > { %p216_p9 = pnand %p1616_p7, %p215_p8 }
   0xd   : > { %p245_p10 = scmp.lt.s32.totalorder (!%p216_p9), %s2469_s25, 1  ;;  %s2398_s14 = smov (!%p216_p9), 127   ;;  %v2400_v11 = vmov (!%p216_p9), 0.0|0.0   ;;  %v503_v16 = vld [vmem:[%s3234_s1 + $0x8] sm:$0xff] (!%p216_p9)  ;;  %vm510_vm0 = vcmask (!%p216_p9), 130048   ;;  %vm286_vm1 = vcmask (!%p216_p9), 1039360  }
   0xe   : > { %219 = sbr.rel (%p216_p9) target bundleno = 1791 (0x6ff), region = 44  ;;  %s2399_s15 = smov (!%p216_p9), 126   ;;  %1910 = vmatprep.subr.bf16.mxu1 (!%p216_p9), %v2400_v11  ;;  %1619 = vmatprep.mubr.msk.f32.mxu0 (!%p216_p9), %vm510_vm0, %v503_v16  ;;  %vm315_vm2 = vcmask (!%p216_p9), 1031168   ;;  %vm344_vm3 = vcmask (!%p216_p9), 900096   ;;  %vm373_vm4 = vcmask (!%p216_p9), 891904   ;;  %vm402_vm5 = vcmask (!%p216_p9), 883712  }
   0xf   : > { %s2401_s16 = smov (!%p216_p9), 110   ;;  %s2402_s17 = smov (!%p216_p9), 109   ;;  %1623 = vmatprep.mubr.msk.f32.mxu1 (!%p216_p9), %vm510_vm0, %v503_v16  ;;  %vm431_vm6 = vcmask (!%p216_p9), 752640   ;;  %vm460_vm7 = vcmask (!%p216_p9), 744448   ;;  %vm489_vm8 = vcmask (!%p216_p9), 736256   ;;  %vm1148_vm9 = vcmask (!%p216_p9), 261120  }
  0x10   : > { %s2403_s18 = smov (!%p216_p9), 108   ;;  %s2404_s19 = smov (!%p216_p9), 92   ;;  %vm1141_vm10 = vcmask (!%p216_p9), 7168  }
  0x11   : > { %s2405_s20 = smov (!%p216_p9), 91   ;;  %s2406_s29 = smov (!%p216_p9), 90  }
  0x15   : > { %s246_s9 = scalar_select %p245_p10, %s2469_s25, 1 }
  0x17   : > { %s1636_s10 = sshll.u32 %s246_s9, 6  ;;  %s2407_s9 = smov 1  }
  0x18   : > { %s249_s13 = scalar_lea.vmem %s3233_s0, %s1636_s10 }
  0x19   : > { %v255_v0 = vld [vmem:[%s249_s13 + $0x8] sm:$0xff]  ;;  %v256_v1 = vld [vmem:[%s249_s13 + $0x10] sm:$0xff]  ;;  %v254_v2 = vld [vmem:[%s249_s13] sm:$0xff] }
  0x1a   : > { %v2132_v3 = vpack.i.bf16 %v256_v1, %v255_v0  ;;  %v258_v4 = vld [vmem:[%s249_s13 + $0x20] sm:$0xff]  ;;  %v259_v5 = vld [vmem:[%s249_s13 + $0x28] sm:$0xff]  ;;  %v260_v6 = vld [vmem:[%s249_s13 + $0x30] sm:$0xff] }
  0x1b   : > { %v2142_v7 = vpack.i.bf16 %v258_v4, %v254_v2  ;;  %v2137_v8 = vpack.i.bf16 %v260_v6, %v259_v5  ;;  %v1874_v9 = vpack.c.bf16 %v259_v5, %v255_v0  ;;  %v1876_v10 = vpack.c.bf16 %v258_v4, %v254_v2  ;;  %v257_v13 = vld [vmem:[%s249_s13 + $0x18] sm:$0xff] }
  0x1c   : > { %2133 = vrot.lane.b32.xlu0 %v2132_v3, %s2398_s14  ;;  %v1911_v12 = vpack.c.bf16 %v260_v6, %v256_v1  ;;  %v261_v14 = vld [vmem:[%s249_s13 + $0x38] sm:$0xff] }
  0x1d   : > { %2143 = vrot.lane.b32.xlu1 %v2142_v7, %s2398_s14  ;;  %1875 = vmatprep.subr.bf16.mxu0 %v1874_v9  ;;  %v2177_v15 = vpack.i.bf16 %v261_v14, %v257_v13 }
  0x1e   : > { %1877 = vmatpush1.bf16.msra.mxu0 %v1876_v10  ;;  %1912 = vmatpush1.bf16.msra.mxu1 %v1911_v12 }
  0x1f   : > { %1913 = vmatprep.subr.bf16.mxu1 %v2400_v11 }
  0x20   : > { %2138 = vrot.lane.b32.xlu0 %v2137_v8, %s2398_s14 }
  0x21   : > { %2148 = vrot.lane.b32.xlu1 %v2132_v3, %s2399_s15 }
  0x24   : > { %2153 = vrot.lane.b32.xlu0 %v2137_v8, %s2399_s15 }
  0x25   : > { %2158 = vrot.lane.b32.xlu1 %v2142_v7, %s2399_s15 }
  0x28   : > { %2163 = vrot.lane.b32.xlu0 %v2132_v3, %s2401_s16 }
  0x29   : > { %2168 = vrot.lane.b32.xlu1 %v2137_v8, %s2401_s16 }
  0x2c   : > { %2173 = vrot.lane.b32.xlu0 %v2142_v7, %s2401_s16 }
  0x2d   : > { %2178 = vrot.lane.b32.xlu1 %v2177_v15, %s2398_s14  ;;  %s2410_s14 = smov [#allocation2]  }
  0x30   : > { %2183 = vrot.lane.b32.xlu0 %v2132_v3, %s2402_s17 }
  0x31   : > { %2188 = vrot.lane.b32.xlu1 %v2137_v8, %s2402_s17 }
  0x34   : > { %2193 = vrot.lane.b32.xlu0 %v2142_v7, %s2402_s17 }
  0x35   : > { %2198 = vrot.lane.b32.xlu1 %v2177_v15, %s2399_s15  ;;  %s2338_s15 = sshll.u32 %s2410_s14, 4  ;;  %s2339_s15 = int_to_ptr.vmem [resolvable:$false] %s2338_s15 }
  0x38   : > { %2203 = vrot.lane.b32.xlu0 %v2132_v3, %s2403_s18 }
  0x39   : > { %2208 = vrot.lane.b32.xlu1 %v2137_v8, %s2403_s18 }
  0x3c   : > { %2213 = vrot.lane.b32.xlu0 %v2142_v7, %s2403_s18 }
  0x3d   : > { %2218 = vrot.lane.b32.xlu1 %v2177_v15, %s2401_s16  ;;  %s2340_s16 = scalar_lea.vmem %s2339_s15, 3072 }
  0x40   : > { %2223 = vrot.lane.b32.xlu0 %v2132_v3, %s2404_s19 }
  0x41   : > { %2228 = vrot.lane.b32.xlu1 %v2137_v8, %s2404_s19 }
  0x44   : > { %2233 = vrot.lane.b32.xlu0 %v2142_v7, %s2404_s19 }
  0x45   : > { %2238 = vrot.lane.b32.xlu1 %v2177_v15, %s2402_s17 }
  0x48   : > { %2243 = vrot.lane.b32.xlu0 %v2132_v3, %s2405_s20 }
  0x49   : > { %2248 = vrot.lane.b32.xlu1 %v2137_v8, %s2405_s20 }
  0x4c   : > { %2253 = vrot.lane.b32.xlu0 %v2142_v7, %s2405_s20 }
  0x4d   : > { %2258 = vrot.lane.b32.xlu1 %v2177_v15, %s2403_s18 }
  0x50   : > { %2263 = vrot.lane.b32.xlu0 %v2132_v3, %s2406_s29 }
  0x51   : > { %2268 = vrot.lane.b32.xlu1 %v2137_v8, %s2406_s29 }
  0x54   : > { %2273 = vrot.lane.b32.xlu0 %v2142_v7, %s2406_s29 }
  0x55   : > { %2278 = vrot.lane.b32.xlu1 %v2177_v15, %s2404_s19 }
  0x58   : > { %2283 = vrot.lane.b32.xlu0 %v2177_v15, %s2405_s20  ;;  %s242_s20 = sand.u32 1, %s2388_s22  }
  0x59   : > { %2288 = vrot.lane.b32.xlu1 %v2177_v15, %s2406_s29  ;;  %s2077_s26 = smul.u32 96, %s242_s20  ;;  %s3192_s12 = scalar_lea.sflag [#allocation3], %s242_s20 }
  0x5a   : > { %s2078_s29 = smul.u32 1536, %s2469_s25 }
  0x5b   : > { %s3158_s28 = scalar_lea.vmem [#allocation2], %s2077_s26 }
  0x5c   : > { %s3186_s11 = scalar_lea.hbm %s3239_s6, %s2078_s29 }
  0x8e   : > { %v2134_v17 = vpop.permute.xlu0 %2133 }
  0x8f   : > { %v2144_v18 = vpop.permute.xlu1 %2143  ;;  %v2136_v19 = vunpack.i.h.bf16 %v2134_v17  ;;  %v2135_v20 = vunpack.i.l.bf16 %v2134_v17 }
  0x90   : > { %v2145_v21 = vunpack.i.l.bf16 %v2144_v18  ;;  %v2146_v23 = vunpack.i.h.bf16 %v2144_v18 }
  0x91   : > { %v288_v27 = vsel %vm286_vm1, %v2135_v20, %v2136_v19 }
  0x92   : > { %v2139_v22 = vpop.permute.xlu0 %2138  ;;  %v287_v28 = vsel %vm286_vm1, %v2145_v21, %v2135_v20 }
  0x93   : > { %v2141_v24 = vunpack.i.h.bf16 %v2139_v22  ;;  %v2140_v25 = vunpack.i.l.bf16 %v2139_v22  ;;  %v2508_v26 = vpop.permute.xlu1 %2148 }
  0x94   : > { %v2151_v29 = vunpack.i.h.bf16 %v2508_v26  ;;  %v2150_v30 = vunpack.i.l.bf16 %v2508_v26 }
  0x95   : > { %v291_v31 = vsel %vm286_vm1, %v2140_v25, %v2141_v24  ;;  %v290_v32 = vsel %vm286_vm1, %v2146_v23, %v2140_v25 }
  0x96   : > { %v2516_v33 = vpop.permute.xlu0 %2153  ;;  %v1878_v34 = vpack.c.bf16 %v291_v31, %v288_v27  ;;  %v1880_v35 = vpack.c.bf16 %v290_v32, %v287_v28  ;;  %v317_v41 = vsel %vm315_vm2, %v2150_v30, %v2151_v29 }
  0x97   : > { %v2156_v36 = vunpack.i.h.bf16 %v2516_v33  ;;  %v2155_v37 = vunpack.i.l.bf16 %v2516_v33  ;;  %v2159_v38 = vpop.permute.xlu1 %2158 }
  0x98   : > { %v2161_v39 = vunpack.i.h.bf16 %v2159_v38  ;;  %v2160_v40 = vunpack.i.l.bf16 %v2159_v38  ;;  %1879 = vmatprep.subr.bf16.mxu0 %v1878_v34 }
  0x99   : > { %1881 = vmatpush1.bf16.msra.mxu0 %v1880_v35  ;;  %v320_v42 = vsel %vm315_vm2, %v2155_v37, %v2156_v36 }
  0x9a   : > { %v2526_v43 = vpop.permute.xlu0 %2163  ;;  %v1882_v44 = vpack.c.bf16 %v320_v42, %v317_v41  ;;  %v316_v45 = vsel %vm315_vm2, %v2160_v40, %v2150_v30  ;;  %v319_v46 = vsel %vm315_vm2, %v2161_v39, %v2155_v37 }
  0x9b   : > { %v2166_v47 = vunpack.i.h.bf16 %v2526_v43  ;;  %v2165_v48 = vunpack.i.l.bf16 %v2526_v43  ;;  %v2532_v49 = vpop.permute.xlu1 %2168  ;;  %v1884_v50 = vpack.c.bf16 %v319_v46, %v316_v45 }
  0x9c   : > { %v2171_v51 = vunpack.i.h.bf16 %v2532_v49  ;;  %v2170_v52 = vunpack.i.l.bf16 %v2532_v49  ;;  %1883 = vmatprep.subr.bf16.mxu0 %v1882_v44 }
  0x9d   : > { %1885 = vmatpush1.bf16.msra.mxu0 %v1884_v50  ;;  %v346_v53 = vsel %vm344_vm3, %v2165_v48, %v2166_v47 }
  0x9e   : > { %v2174_v54 = vpop.permute.xlu0 %2173  ;;  %v349_v55 = vsel %vm344_vm3, %v2170_v52, %v2171_v51 }
  0x9f   : > { %v2176_v56 = vunpack.i.h.bf16 %v2174_v54  ;;  %v2175_v57 = vunpack.i.l.bf16 %v2174_v54  ;;  %v2179_v58 = vpop.permute.xlu1 %2178  ;;  %v1886_v59 = vpack.c.bf16 %v349_v55, %v346_v53 }
  0xa0   : > { %v2181_v60 = vunpack.i.h.bf16 %v2179_v58  ;;  %v2180_v61 = vunpack.i.l.bf16 %v2179_v58 }
  0xa1   : > { %1887 = vmatprep.subr.bf16.mxu0 %v1886_v59  ;;  %v345_v62 = vsel %vm344_vm3, %v2175_v57, %v2165_v48  ;;  %v348_v63 = vsel %vm344_vm3, %v2176_v56, %v2170_v52 }
  0xa2   : > { %v2544_v0 = vpop.permute.xlu0 %2183  ;;  %v1888_v1 = vpack.c.bf16 %v348_v63, %v345_v62  ;;  %v289_v2 = vsel %vm286_vm1, %v2136_v19, %v2180_v61  ;;  %v292_v3 = vsel %vm286_vm1, %v2141_v24, %v2181_v60 }
  0xa3   : > { %v2186_v4 = vunpack.i.h.bf16 %v2544_v0  ;;  %v2185_v5 = vunpack.i.l.bf16 %v2544_v0  ;;  %v2550_v6 = vpop.permute.xlu1 %2188  ;;  %v1914_v7 = vpack.c.bf16 %v292_v3, %v289_v2 }
  0xa4   : > { %v2191_v8 = vunpack.i.h.bf16 %v2550_v6  ;;  %v2190_v9 = vunpack.i.l.bf16 %v2550_v6  ;;  %1889 = vmatpush1.bf16.msra.mxu0 %v1888_v1 }
  0xa5   : > { %1915 = vmatpush1.bf16.msra.mxu1 %v1914_v7  ;;  %v375_v10 = vsel %vm373_vm4, %v2185_v5, %v2186_v4 }
  0xa6   : > { %v2194_v12 = vpop.permute.xlu0 %2193  ;;  %v378_v13 = vsel %vm373_vm4, %v2190_v9, %v2191_v8  ;;  %1916 = vmatprep.subr.bf16.mxu1 %v2400_v11 }
  0xa7   : > { %v2196_v14 = vunpack.i.h.bf16 %v2194_v12  ;;  %v2195_v15 = vunpack.i.l.bf16 %v2194_v12  ;;  %v2199_v16 = vpop.permute.xlu1 %2198  ;;  %v1890_v17 = vpack.c.bf16 %v378_v13, %v375_v10 }
  0xa8   : > { %v2201_v18 = vunpack.i.h.bf16 %v2199_v16  ;;  %v2200_v19 = vunpack.i.l.bf16 %v2199_v16 }
  0xa9   : > { %1891 = vmatprep.subr.bf16.mxu0 %v1890_v17  ;;  %v374_v20 = vsel %vm373_vm4, %v2195_v15, %v2185_v5  ;;  %v377_v21 = vsel %vm373_vm4, %v2196_v14, %v2190_v9 }
  0xaa   : > { %v2563_v22 = vpop.permute.xlu0 %2203  ;;  %v1892_v23 = vpack.c.bf16 %v377_v21, %v374_v20  ;;  %v318_v24 = vsel %vm315_vm2, %v2151_v29, %v2200_v19  ;;  %v321_v25 = vsel %vm315_vm2, %v2156_v36, %v2201_v18 }
  0xab   : > { %v2206_v27 = vunpack.i.h.bf16 %v2563_v22  ;;  %v2205_v28 = vunpack.i.l.bf16 %v2563_v22  ;;  %v2573_v30 = vpop.permute.xlu1 %2208  ;;  %v1917_v31 = vpack.c.bf16 %v321_v25, %v318_v24 }
  0xac   : > { %v2211_v32 = vunpack.i.h.bf16 %v2573_v30  ;;  %v2210_v34 = vunpack.i.l.bf16 %v2573_v30  ;;  %1893 = vmatpush1.bf16.msra.mxu0 %v1892_v23  ;;  %v713_v30 = vld [vmem:[%s3238_s5 + $0x80] sm:$0xff] }
  0xad   : > { %1918 = vmatpush1.bf16.msra.mxu1 %v1917_v31  ;;  %v404_v26 = vsel %vm402_vm5, %v2205_v28, %v2206_v27 }
  0xae   : > { %v2214_v29 = vpop.permute.xlu0 %2213  ;;  %v407_v33 = vsel %vm402_vm5, %v2210_v34, %v2211_v32  ;;  %1919 = vmatprep.subr.bf16.mxu1 %v2400_v11 }
  0xaf   : > { %v2216_v35 = vunpack.i.h.bf16 %v2214_v29  ;;  %v2215_v36 = vunpack.i.l.bf16 %v2214_v29  ;;  %v2219_v37 = vpop.permute.xlu1 %2218  ;;  %v1894_v38 = vpack.c.bf16 %v407_v33, %v404_v26 }
  0xb0   : > { %v2221_v39 = vunpack.i.h.bf16 %v2219_v37  ;;  %v2220_v40 = vunpack.i.l.bf16 %v2219_v37 }
  0xb1   : > { %1895 = vmatprep.subr.bf16.mxu0 %v1894_v38  ;;  %v403_v41 = vsel %vm402_vm5, %v2215_v36, %v2205_v28  ;;  %v406_v42 = vsel %vm402_vm5, %v2216_v35, %v2210_v34 }
  0xb2   : > { %v2586_v44 = vpop.permute.xlu0 %2223  ;;  %v1896_v45 = vpack.c.bf16 %v406_v42, %v403_v41  ;;  %v347_v46 = vsel %vm344_vm3, %v2166_v47, %v2220_v40  ;;  %v350_v48 = vsel %vm344_vm3, %v2171_v51, %v2221_v39 }
  0xb3   : > { %v2226_v50 = vunpack.i.h.bf16 %v2586_v44  ;;  %v2225_v52 = vunpack.i.l.bf16 %v2586_v44  ;;  %v2596_v53 = vpop.permute.xlu1 %2228  ;;  %v1920_v54 = vpack.c.bf16 %v350_v48, %v347_v46 }
  0xb4   : > { %v2231_v55 = vunpack.i.h.bf16 %v2596_v53  ;;  %v2230_v56 = vunpack.i.l.bf16 %v2596_v53  ;;  %1897 = vmatpush1.bf16.msra.mxu0 %v1896_v45 }
  0xb5   : > { %1921 = vmatpush1.bf16.msra.mxu1 %v1920_v54  ;;  %v433_v43 = vsel %vm431_vm6, %v2225_v52, %v2226_v50  ;;  %v698_v54 = vld [vmem:[%s3238_s5 + $0x8] sm:$0xff] }
  0xb6   : > { %v2234_v47 = vpop.permute.xlu0 %2233  ;;  %v436_v49 = vsel %vm431_vm6, %v2230_v56, %v2231_v55  ;;  %1922 = vmatprep.subr.bf16.mxu1 %v2400_v11 }
  0xb7   : > { %v2236_v51 = vunpack.i.h.bf16 %v2234_v47  ;;  %v2235_v57 = vunpack.i.l.bf16 %v2234_v47  ;;  %v2239_v58 = vpop.permute.xlu1 %2238  ;;  %v1898_v59 = vpack.c.bf16 %v436_v49, %v433_v43 }
  0xb8   : > { %v2241_v60 = vunpack.i.h.bf16 %v2239_v58  ;;  %v2240_v61 = vunpack.i.l.bf16 %v2239_v58 }
  0xb9   : > { %1899 = vmatprep.subr.bf16.mxu0 %v1898_v59  ;;  %v432_v62 = vsel %vm431_vm6, %v2235_v57, %v2225_v52  ;;  %v435_v63 = vsel %vm431_vm6, %v2236_v51, %v2230_v56  ;;  %v697_v52 = vld [vmem:[%s3238_s5] sm:$0xff]  ;;  %v715_v51 = vld [vmem:[%s3238_s5 + $0x90] sm:$0xff]  ;;  %v716_v57 = vld [vmem:[%s3238_s5 + $0x98] sm:$0xff] }
  0xba   : > { %v2609_v1 = vpop.permute.xlu0 %2243  ;;  %v1900_v2 = vpack.c.bf16 %v435_v63, %v432_v62  ;;  %v376_v3 = vsel %vm373_vm4, %v2186_v4, %v2240_v61  ;;  %v379_v5 = vsel %vm373_vm4, %v2191_v8, %v2241_v60  ;;  %v2676_v53 = vpack.c.bf16 %v698_v54, %v697_v52  ;;  %v707_v54 = vld [vmem:[%s3238_s5 + $0x50] sm:$0xff] }
  0xbb   : > { %v2246_v7 = vunpack.i.h.bf16 %v2609_v1  ;;  %v2245_v9 = vunpack.i.l.bf16 %v2609_v1  ;;  %v2619_v10 = vpop.permute.xlu1 %2248  ;;  %v1923_v12 = vpack.c.bf16 %v379_v5, %v376_v3  ;;  %v2688_v3 = vpack.c.bf16 %v716_v57, %v715_v51  ;;  %v699_v5 = vld [vmem:[%s3238_s5 + $0x10] sm:$0xff]  ;;  %v700_v1 = vld [vmem:[%s3238_s5 + $0x18] sm:$0xff]  ;;  %v737_v51 = vld [vmem:[%s3238_s5 + $0x140] sm:$0xff] }
  0xbc   : > { %v2251_v13 = vunpack.i.h.bf16 %v2619_v10  ;;  %v2250_v14 = vunpack.i.l.bf16 %v2619_v10  ;;  %1901 = vmatpush1.bf16.msra.mxu0 %v1900_v2  ;;  %v505_v2 = vld [vmem:[%s3234_s1 + $0x18] sm:$0xff]  ;;  %v718_v10 = vld [vmem:[%s3238_s5 + $0xa8] sm:$0xff] }
  0xbd   : > { %1924 = vmatpush1.bf16.msra.mxu1 %v1923_v12  ;;  %v462_v0 = vsel %vm460_vm7, %v2245_v9, %v2246_v7  ;;  %v729_v12 = vld [vmem:[%s3238_s5 + $0x100] sm:$0xff]  ;;  %v738_v57 = vld [vmem:[%s3238_s5 + $0x148] sm:$0xff] }
  0xbe   : > { %v2254_v4 = vpop.permute.xlu0 %2253  ;;  %v465_v6 = vsel %vm460_vm7, %v2250_v14, %v2251_v13  ;;  %1925 = vmatprep.subr.bf16.mxu1 %v2400_v11 }
  0xbf   : > { %v2256_v8 = vunpack.i.h.bf16 %v2254_v4  ;;  %v2255_v15 = vunpack.i.l.bf16 %v2254_v4  ;;  %v2259_v16 = vpop.permute.xlu1 %2258  ;;  %v1902_v17 = vpack.c.bf16 %v465_v6, %v462_v0  ;;  %v2716_v6 = vpack.c.bf16 %v700_v1, %v699_v5  ;;  %v712_v5 = vld [vmem:[%s3238_s5 + $0x78] sm:$0xff] }
  0xc0   : > { %v2261_v18 = vunpack.i.h.bf16 %v2259_v16  ;;  %v2260_v19 = vunpack.i.l.bf16 %v2259_v16  ;;  %v701_v16 = vld [vmem:[%s3238_s5 + $0x20] sm:$0xff] }
  0xc1   : > { %1903 = vmatprep.subr.bf16.mxu0 %v1902_v17  ;;  %v461_v20 = vsel %vm460_vm7, %v2255_v15, %v2245_v9  ;;  %v464_v21 = vsel %vm460_vm7, %v2256_v8, %v2250_v14  ;;  %v717_v9 = vld [vmem:[%s3238_s5 + $0xa0] sm:$0xff]  ;;  %v504_v14 = vld [vmem:[%s3234_s1 + $0x10] sm:$0xff]  ;;  %v507_v8 = vld [vmem:[%s3234_s1 + $0x28] sm:$0xff] }
  0xc2   : > { %v2632_v23 = vpop.permute.xlu0 %2263  ;;  %v1904_v24 = vpack.c.bf16 %v464_v21, %v461_v20  ;;  %v405_v25 = vsel %vm402_vm5, %v2206_v27, %v2260_v19  ;;  %v408_v28 = vsel %vm402_vm5, %v2211_v32, %v2261_v18  ;;  %v714_v32 = vld [vmem:[%s3238_s5 + $0x88] sm:$0xff]  ;;  %v2722_v15 = vpack.c.bf16 %v718_v10, %v717_v9  ;;  %v719_v20 = vld [vmem:[%s3238_s5 + $0xb0] sm:$0xff]  ;;  %v506_v21 = vld [vmem:[%s3234_s1 + $0x20] sm:$0xff] }
  0xc3   : > { %v2266_v31 = vunpack.i.h.bf16 %v2632_v23  ;;  %v2265_v34 = vunpack.i.l.bf16 %v2632_v23  ;;  %v2269_v26 = vpop.permute.xlu1 %2268  ;;  %v1926_v29 = vpack.c.bf16 %v408_v28, %v405_v25  ;;  %v2653_v48 = vpack.c.bf16 %v714_v32, %v713_v30  ;;  %v702_v17 = vld [vmem:[%s3238_s5 + $0x28] sm:$0xff]  ;;  %v731_v23 = vld [vmem:[%s3238_s5 + $0x110] sm:$0xff]  ;;  %v509_v25 = vld [vmem:[%s3234_s1 + $0x38] sm:$0xff] }
  0xc4   : > { %v2271_v33 = vunpack.i.h.bf16 %v2269_v26  ;;  %v2270_v35 = vunpack.i.l.bf16 %v2269_v26  ;;  %1905 = vmatpush1.bf16.msra.mxu0 %v1904_v24  ;;  %v732_v24 = vld [vmem:[%s3238_s5 + $0x118] sm:$0xff]  ;;  %v2754_v28 = vpack.c.bf16 %v702_v17, %v701_v16 }
  0xc5   : > { %1927 = vmatpush1.bf16.msra.mxu1 %v1926_v29  ;;  %v491_v36 = vsel %vm489_vm8, %v2265_v34, %v2266_v31  ;;  %v704_v26 = vld [vmem:[%s3238_s5 + $0x38] sm:$0xff]  ;;  %v2765_v29 = vpack.c.bf16 %v732_v24, %v731_v23 }
  0xc6   : > { %v2274_v22 = vpop.permute.xlu0 %2273  ;;  %v494_v27 = vsel %vm489_vm8, %v2270_v35, %v2271_v33  ;;  %1928 = vmatprep.subr.bf16.mxu1 %v2400_v11  ;;  %v740_v9 = vld [vmem:[%s3238_s5 + $0x158] sm:$0xff] }
  0xc7   : > { %v2276_v37 = vunpack.i.h.bf16 %v2274_v22  ;;  %v2275_v38 = vunpack.i.l.bf16 %v2274_v22  ;;  %v2279_v39 = vpop.permute.xlu1 %2278  ;;  %v1906_v40 = vpack.c.bf16 %v494_v27, %v491_v36  ;;  %v508_v36 = vld [vmem:[%s3234_s1 + $0x30] sm:$0xff]  ;;  %v733_v22 = vld [vmem:[%s3238_s5 + $0x120] sm:$0xff]  ;;  %v734_v27 = vld [vmem:[%s3238_s5 + $0x128] sm:$0xff] }
  0xc8   : > { %v2281_v41 = vunpack.i.h.bf16 %v2279_v39  ;;  %v2280_v42 = vunpack.i.l.bf16 %v2279_v39  ;;  %v2798_v39 = vpack.c.bf16 %v734_v27, %v733_v22 }
  0xc9   : > { %1907 = vmatprep.subr.bf16.mxu0 %v1906_v40  ;;  %v490_v45 = vsel %vm489_vm8, %v2275_v38, %v2265_v34  ;;  %v493_v46 = vsel %vm489_vm8, %v2276_v37, %v2270_v35  ;;  %v703_v34 = vld [vmem:[%s3238_s5 + $0x30] sm:$0xff]  ;;  %v722_v35 = vld [vmem:[%s3238_s5 + $0xc8] sm:$0xff]  ;;  %v705_v37 = vld [vmem:[%s3238_s5 + $0x40] sm:$0xff] }
  0xca   : > { %v2284_v56 = vpop.permute.xlu0 %2283  ;;  %v1908_v43 = vpack.c.bf16 %v493_v46, %v490_v45  ;;  %v434_v47 = vsel %vm431_vm6, %v2226_v50, %v2280_v42  ;;  %v437_v49 = vsel %vm431_vm6, %v2231_v55, %v2281_v41  ;;  %v502_v50 = vld [vmem:[%s3234_s1] sm:$0xff]  ;;  %v2785_v30 = vpack.c.bf16 %v704_v26, %v703_v34  ;;  %v706_v38 = vld [vmem:[%s3238_s5 + $0x48] sm:$0xff]  ;;  %v723_v40 = vld [vmem:[%s3238_s5 + $0xd0] sm:$0xff] }
  0xcb   : > { %v2286_v58 = vunpack.i.h.bf16 %v2284_v56  ;;  %v2285_v59 = vunpack.i.l.bf16 %v2284_v56  ;;  %v2289_v60 = vpop.permute.xlu1 %2288  ;;  %v1929_v61 = vpack.c.bf16 %v437_v49, %v434_v47  ;;  %v724_v41 = vld [vmem:[%s3238_s5 + $0xd8] sm:$0xff]  ;;  %v735_v42 = vld [vmem:[%s3238_s5 + $0x130] sm:$0xff]  ;;  %v2814_v46 = vpack.c.bf16 %v706_v38, %v705_v37  ;;  %v725_v47 = vld [vmem:[%s3238_s5 + $0xe0] sm:$0xff] }
  0xcc   : > { %v2291_v62 = vunpack.i.h.bf16 %v2289_v60  ;;  %v2290_v44 = vunpack.i.l.bf16 %v2289_v60  ;;  %1909 = vmatpush1.bf16.msra.mxu0 %v1908_v43  ;;  %v736_v45 = vld [vmem:[%s3238_s5 + $0x138] sm:$0xff]  ;;  %v2818_v52 = vpack.c.bf16 %v724_v41, %v723_v40  ;;  %v726_v49 = vld [vmem:[%s3238_s5 + $0xe8] sm:$0xff]  ;;  %v709_v60 = vld [vmem:[%s3238_s5 + $0x60] sm:$0xff] }
  0xcd   : > { %1930 = vmatpush1.bf16.msra.mxu1 %v1929_v61  ;;  %v463_v55 = vsel %vm460_vm7, %v2246_v7, %v2285_v59  ;;  %v466_v63 = vsel %vm460_vm7, %v2251_v13, %v2286_v58  ;;  %1938 = vmatprep.subr.bf16.mxu0 %v2653_v48  ;;  %v730_v13 = vld [vmem:[%s3238_s5 + $0x108] sm:$0xff]  ;;  %v708_v56 = vld [vmem:[%s3238_s5 + $0x58] sm:$0xff]  ;;  %v2827_v43 = vpack.c.bf16 %v736_v45, %v735_v42 }
  0xce   : > { %1931 = vmatprep.subr.bf16.mxu1 %v2400_v11  ;;  %v1932_v7 = vpack.c.bf16 %v466_v63, %v463_v55  ;;  %v492_v0 = vsel %vm489_vm8, %v2266_v31, %v2290_v44  ;;  %v495_v4 = vsel %vm489_vm8, %v2271_v33, %v2291_v62  ;;  %v2731_v18 = vpack.c.bf16 %v730_v13, %v729_v12  ;;  %v721_v33 = vld [vmem:[%s3238_s5 + $0xc0] sm:$0xff]  ;;  %v710_v61 = vld [vmem:[%s3238_s5 + $0x68] sm:$0xff]  ;;  %v727_v44 = vld [vmem:[%s3238_s5 + $0xf0] sm:$0xff] }
  0xcf   : > { %588 = vmatmul.mubr.f32.vlgmr.msra.gmra.mrb[0].mxu0 %v502_v50  ;;  %v1935_v19 = vpack.c.bf16 %v495_v4, %v492_v0  ;;  %v2789_v32 = vpack.c.bf16 %v722_v35, %v721_v33  ;;  %v2843_v58 = vpack.c.bf16 %v708_v56, %v707_v54  ;;  %v2847_v59 = vpack.c.bf16 %v726_v49, %v725_v47  ;;  %v741_v12 = vld [vmem:[%s3238_s5 + $0x160] sm:$0xff]  ;;  %v744_v0 = vld [vmem:[%s3238_s5 + $0x178] sm:$0xff] }
  0xd0   : > { %1620 = vmatprep.mubr.msk.f32.mxu0 %vm510_vm0, %v505_v2  ;;  %1940 = vmatpush3.bf16.msra.mxu0 %v2676_v53  ;;  %v2856_v62 = vpack.c.bf16 %v738_v57, %v737_v51  ;;  %v2865_v55 = vpack.c.bf16 %v710_v61, %v709_v60 }
  0xd1   : > { %1933 = vmatpush1.bf16.msra.mxu1 %v1932_v7  ;;  %1942 = vmatprep.subr.bf16.mxu0 %v2688_v3  ;;  %v739_v7 = vld [vmem:[%s3238_s5 + $0x150] sm:$0xff] }
  0xd2   : > { %1934 = vmatprep.subr.bf16.mxu1 %v2400_v11  ;;  %v720_v11 = vld [vmem:[%s3238_s5 + $0xb8] sm:$0xff]  ;;  %v2891_v10 = vpack.c.bf16 %v740_v9, %v739_v7  ;;  %v3030_v9 = vld [vmem:[%s3235_s2 + $0x10] sm:$0xff] }
  0xd3   : > { %594 = vmatmul.mubr.f32.gmra.mrb[2].mxu0 %v504_v14  ;;  %v2757_v31 = vpack.c.bf16 %v720_v11, %v719_v20 }
  0xd4   : > { %1621 = vmatprep.mubr.msk.f32.mxu0 %vm510_vm0, %v507_v8  ;;  %1944 = vmatpush3.bf16.msra.mxu0 %v2716_v6 }
  0xd5   : > { %1936 = vmatpush1.bf16.msra.mxu1 %v1935_v19  ;;  %1946 = vmatprep.subr.bf16.mxu0 %v2722_v15 }
  0xd6   : > { %1970 = vmatprep.subr.bf16.mxu1 %v2731_v18 }
  0xd7   : > { %600 = vmatmul.mubr.f32.gmra.mrb[4].mxu0 %v506_v21 }
  0xd8   : > { %677 = vmatmul.mubr.f32.vlgmr.msra.gmra.mrb[0].mxu1 %v502_v50  ;;  %1622 = vmatprep.mubr.msk.f32.mxu0 %vm510_vm0, %v509_v25  ;;  %v728_v50 = vld [vmem:[%s3238_s5 + $0xf8] sm:$0xff] }
  0xd9   : > { %1624 = vmatprep.mubr.msk.f32.mxu1 %vm510_vm0, %v505_v2  ;;  %1948 = vmatpush3.bf16.msra.mxu0 %v2754_v28  ;;  %v2869_v63 = vpack.c.bf16 %v728_v50, %v727_v44  ;;  %v711_v2 = vld [vmem:[%s3238_s5 + $0x70] sm:$0xff]  ;;  %v3017_v44 = vld [vmem:[%s3235_s2] sm:$0xff] }
  0xda   : > { %1972 = vmatpush3.bf16.msra.mxu1 %v2731_v18  ;;  %1950 = vmatprep.subr.bf16.mxu0 %v2757_v31  ;;  %v2879_v1 = vpack.c.bf16 %v712_v5, %v711_v2  ;;  %v935_v50 = vmul.f32 2.0, %v3017_v44 }
  0xdb   : > { %606 = vmatmul.mubr.f32.gmra.mrb[6].mxu0 %v508_v36  ;;  %1974 = vmatprep.subr.bf16.mxu1 %v2765_v29 }
  0xdc   : > { %682 = vmatmul.mubr.f32.gmra.mrb[2].mxu1 %v504_v14  ;;  %v743_v14 = vld [vmem:[%s3238_s5 + $0x170] sm:$0xff] }
  0xdd   : > { %1625 = vmatprep.mubr.msk.f32.mxu1 %vm510_vm0, %v507_v8  ;;  %1952 = vmatpush3.bf16.msra.mxu0 %v2785_v30  ;;  %v2911_v4 = vpack.c.bf16 %v744_v0, %v743_v14  ;;  %v937_v14 = vmul.f32 2.0, %v3030_v9 }
  0xde   : > { %1976 = vmatpush3.bf16.msra.mxu1 %v2765_v29  ;;  %1954 = vmatprep.subr.bf16.mxu0 %v2789_v32 }
  0xdf   : > { %1978 = vmatprep.subr.bf16.mxu1 %v2798_v39 }
  0xe0   : > { %687 = vmatmul.mubr.f32.gmra.mrb[4].mxu1 %v506_v21 }
  0xe1   : > { %1626 = vmatprep.mubr.msk.f32.mxu1 %vm510_vm0, %v509_v25  ;;  %1956 = vmatpush3.bf16.msra.mxu0 %v2814_v46 }
  0xe2   : > { %1980 = vmatpush3.bf16.msra.mxu1 %v2798_v39  ;;  %1958 = vmatprep.subr.bf16.mxu0 %v2818_v52 }
  0xe3   : > { %1982 = vmatprep.subr.bf16.mxu1 %v2827_v43 }
  0xe4   : > { %692 = vmatmul.mubr.f32.gmra.mrb[6].mxu1 %v508_v36 }
  0xe5   : > { %1960 = vmatpush3.bf16.msra.mxu0 %v2843_v58 }
  0xe6   : > { %1984 = vmatpush3.bf16.msra.mxu1 %v2827_v43  ;;  %1962 = vmatprep.subr.bf16.mxu0 %v2847_v59 }
  0xe7   : > { %1986 = vmatprep.subr.bf16.mxu1 %v2856_v62 }
  0xe9   : > { %1964 = vmatpush3.bf16.msra.mxu0 %v2865_v55 }
  0xea   : > { %1988 = vmatpush3.bf16.msra.mxu1 %v2856_v62  ;;  %1966 = vmatprep.subr.bf16.mxu0 %v2869_v63 }
  0xeb   : > { %1990 = vmatprep.subr.bf16.mxu1 %v2891_v10 }
  0xed   : > { %1968 = vmatpush3.bf16.msra.mxu0 %v2879_v1 }
  0xee   : > { %2002 = vmatprep.subr.bf16.mxu0 %v2653_v48  ;;  %1992 = vmatpush3.bf16.msra.mxu1 %v2891_v10  ;;  %v742_v48 = vld [vmem:[%s3238_s5 + $0x168] sm:$0xff] }
  0xef   : > { %v2901_v13 = vpack.c.bf16 %v742_v48, %v741_v12 }
  0xf1   : > { %1994 = vmatprep.subr.bf16.mxu1 %v2901_v13 }
  0xf2   : > { %1996 = vmatpush3.bf16.msra.mxu1 %v2901_v13 }
  0xf3   : > { %1998 = vmatprep.subr.bf16.mxu1 %v2911_v4 }
  0xf6   : > { %2000 = vmatpush3.bf16.msra.mxu1 %v2911_v4 }
  0xf7   : > { %2034 = vmatprep.subr.bf16.mxu1 %v2731_v18 }
 0x1a2   : > { %v2916_v8 = vpop.f32.mrb[0].mxu0 }
 0x1a3   : > { %v2918_v16 = vpop.f32.mrb[1].mxu0  ;;  %v915_v26 = vmul.f32 %v2916_v8, %v2916_v8 }
 0x1a4   : > { %809 = vmatprep.mubr.f32.mxu0 %v2918_v16 }
 0x1a5   : > { %810 = vmatmul.mubr.f32.vlgmr.msra.gmra.mrb[8].mxu0 %v2916_v8 }
 0x1a6   : > { %2004 = vmatpush3.bf16.msra.mxu0 %v2676_v53  ;;  %v2923_v17 = vpop.f32.mrb[2].mxu0 }
 0x1a7   : > { %v2925_v19 = vpop.f32.mrb[3].mxu0  ;;  %2006 = vmatprep.subr.bf16.mxu0 %v2688_v3  ;;  %v918_v33 = vmul.f32 %v2923_v17, %v2923_v17 }
 0x1a8   : > { %814 = vmatprep.mubr.f32.mxu0 %v2925_v19 }
 0x1a9   : > { %815 = vmatmul.mubr.f32.gmra.mrb[10].mxu0 %v2923_v17 }
 0x1aa   : > { %2008 = vmatpush3.bf16.msra.mxu0 %v2716_v6  ;;  %v2931_v20 = vpop.f32.mrb[4].mxu0 }
 0x1ab   : > { %v2933_v11 = vpop.f32.mrb[5].mxu0  ;;  %v2935_v21 = vpop.f32.mrb[0].mxu1  ;;  %2010 = vmatprep.subr.bf16.mxu0 %v2722_v15  ;;  %v916_v15 = vmul.f32 %v2918_v16, %v2918_v16  ;;  %v921_v36 = vmul.f32 %v2931_v20, %v2931_v20 }
 0x1ac   : > { %v680_v53 = vpop.f32.mrb[1].mxu1  ;;  %819 = vmatprep.mubr.f32.mxu0 %v2933_v11  ;;  %1809 = vmatprep.mubr.f32.mxu1 %v2935_v21  ;;  %v922_v35 = vmul.f32 %v2933_v11, %v2933_v11 }
 0x1ad   : > { %820 = vmatmul.mubr.f32.gmra.mrb[12].mxu0 %v2931_v20  ;;  %v3039_v53 = vld [vmem:[%s3235_s2 + $0x18] sm:$0xff] }
 0x1ae   : > { %2012 = vmatpush3.bf16.msra.mxu0 %v2754_v28  ;;  %v2942_v3 = vpop.f32.mrb[6].mxu0 }
 0x1af   : > { %v2944_v6 = vpop.f32.mrb[2].mxu1  ;;  %v2946_v23 = vpop.f32.mrb[7].mxu0  ;;  %2014 = vmatprep.subr.bf16.mxu0 %v2757_v31 }
 0x1b0   : > { %1810 = vmatmul.mubr.f32.vlgmr.msra.gmra.mrb[8].mxu1 %v2944_v6  ;;  %v685_v24 = vpop.f32.mrb[3].mxu1  ;;  %824 = vmatprep.mubr.f32.mxu0 %v2946_v23  ;;  %v925_v22 = vmul.f32 %v2946_v23, %v2946_v23  ;;  %v920_v27 = vmul.f32 %v2944_v6, %v2944_v6 }
 0x1b1   : > { %2036 = vmatpush3.bf16.msra.mxu1 %v2731_v18  ;;  %825 = vmatmul.mubr.f32.gmra.mrb[14].mxu0 %v2942_v3  ;;  %v917_v18 = vmul.f32 %v2935_v21, %v2935_v21 }
 0x1b2   : > { %2016 = vmatpush3.bf16.msra.mxu0 %v2785_v30  ;;  %1007 = vmatprep.mubr.f32.mxu0 %v916_v15  ;;  %v924_v30 = vmul.f32 %v2942_v3, %v2942_v3  ;;  %v1113_v15 = vmul.f32 %v3017_v44, %v3017_v44 }
 0x1b3   : > { %2038 = vmatprep.subr.bf16.mxu1 %v2765_v29  ;;  %v2957_v25 = vpop.f32.mrb[4].mxu1  ;;  %2018 = vmatprep.subr.bf16.mxu0 %v2789_v32 }
 0x1b4   : > { %v690_v28 = vpop.f32.mrb[5].mxu1  ;;  %1812 = vmatprep.mubr.f32.mxu1 %v2957_v25  ;;  %v923_v32 = vmul.f32 %v2957_v25, %v2957_v25 }
 0x1b5   : > { %2040 = vmatpush3.bf16.msra.mxu1 %v2765_v29  ;;  %v919_v29 = vmul.f32 %v2925_v19, %v2925_v19 }
 0x1b6   : > { %2020 = vmatpush3.bf16.msra.mxu0 %v2814_v46  ;;  %2042 = vmatprep.subr.bf16.mxu1 %v2798_v39 }
 0x1b7   : > { %v2966_v31 = vpop.f32.mrb[6].mxu1  ;;  %2022 = vmatprep.subr.bf16.mxu0 %v2818_v52 }
 0x1b8   : > { %1813 = vmatmul.mubr.f32.gmra.mrb[10].mxu1 %v2966_v31  ;;  %v695_v34 = vpop.f32.mrb[7].mxu1  ;;  %v926_v37 = vmul.f32 %v2966_v31, %v2966_v31 }
 0x1b9   : > { %2044 = vmatpush3.bf16.msra.mxu1 %v2798_v39  ;;  %1847 = vmatprep.mubr.f32.mxu1 %v917_v18 }
 0x1ba   : > { %2024 = vmatpush3.bf16.msra.mxu0 %v2843_v58  ;;  %2046 = vmatprep.subr.bf16.mxu1 %v2827_v43 }
 0x1bb   : > { %2026 = vmatprep.subr.bf16.mxu0 %v2847_v59 }
 0x1bd   : > { %2048 = vmatpush3.bf16.msra.mxu1 %v2827_v43 }
 0x1be   : > { %2028 = vmatpush3.bf16.msra.mxu0 %v2865_v55  ;;  %2050 = vmatprep.subr.bf16.mxu1 %v2856_v62  ;;  %v3023_v55 = vld [vmem:[%s3235_s2 + $0x8] sm:$0xff] }
 0x1bf   : > { %2030 = vmatprep.subr.bf16.mxu0 %v2869_v63  ;;  %v936_v5 = vmul.f32 2.0, %v3023_v55 }
 0x1c1   : > { %2052 = vmatpush3.bf16.msra.mxu1 %v2856_v62 }
 0x1c2   : > { %2032 = vmatpush3.bf16.msra.mxu0 %v2879_v1  ;;  %2054 = vmatprep.subr.bf16.mxu1 %v2891_v10 }
 0x1c5   : > { %2056 = vmatpush3.bf16.msra.mxu1 %v2891_v10  ;;  %1008 = vmatmul.mubr.f32.vlgmr.msra.gmra.mrb[16].mxu0 %v915_v26 }
 0x1c6   : > { %1012 = vmatprep.mubr.f32.mxu0 %v919_v29  ;;  %2058 = vmatprep.subr.bf16.mxu1 %v2901_v13 }
 0x1c9   : > { %2060 = vmatpush3.bf16.msra.mxu1 %v2901_v13  ;;  %1013 = vmatmul.mubr.f32.gmra.mrb[18].mxu0 %v918_v33  ;;  %v938_v33 = vmul.f32 2.0, %v3039_v53 }
 0x1ca   : > { %1017 = vmatprep.mubr.f32.mxu0 %v922_v35  ;;  %2062 = vmatprep.subr.bf16.mxu1 %v2911_v4 }
 0x1cd   : > { %2064 = vmatpush3.bf16.msra.mxu1 %v2911_v4  ;;  %1018 = vmatmul.mubr.f32.gmra.mrb[20].mxu0 %v921_v36  ;;  %v1114_v4 = vmul.f32 %v3023_v55, %v3023_v55  ;;  %v1117_v36 = vmul.f32 256.0, %v1113_v15 }
 0x1ce   : > { %1022 = vmatprep.mubr.f32.mxu0 %v925_v22 }
 0x1cf   : > { %v1118_v29 = vmul.f32 256.0, %v1114_v4 }
 0x1d0   : > { %1848 = vmatmul.mubr.f32.vlgmr.msra.gmra.mrb[12].mxu1 %v920_v27 }
 0x1d1   : > { %1850 = vmatprep.mubr.f32.mxu1 %v923_v32  ;;  %1023 = vmatmul.mubr.f32.gmra.mrb[22].mxu0 %v924_v30  ;;  %v1116_v32 = vmul.f32 %v3039_v53, %v3039_v53 }
 0x1d4   : > { %1851 = vmatmul.mubr.f32.gmra.mrb[14].mxu1 %v926_v37 }
 0x278   : > { %v1669_v38 = vpop.f32.mrb[8].mxu0 }
 0x279   : > { %v1670_v39 = vpop.f32.mrb[9].mxu0 }
 0x27a   : > { %v1671_v40 = vadd.f32 %v1670_v39, %v1669_v38  ;;  %v1115_v38 = vmul.f32 %v3030_v9, %v3030_v9 }
 0x27c   : > { %v1672_v41 = vpop.f32.mrb[10].mxu0 }
 0x27d   : > { %v1673_v42 = vpop.f32.mrb[11].mxu0 }
 0x27e   : > { %v1674_v45 = vadd.f32 %v1673_v42, %v1672_v41 }
 0x280   : > { %v1675_v46 = vpop.f32.mrb[12].mxu0 }
 0x281   : > { %v1676_v52 = vpop.f32.mrb[13].mxu0 }
 0x282   : > { %v1677_v54 = vadd.f32 %v1676_v52, %v1675_v46 }
 0x283   : > { %v1811_v56 = vpop.f32.mrb[8].mxu1 }
 0x284   : > { %v3006_v43 = vadd.f32 %v1811_v56, %v1674_v45  ;;  %v896_v47 = vpop.f32.mrb[9].mxu1  ;;  %v1678_v49 = vpop.f32.mrb[14].mxu0  ;;  %v1120_v56 = vmul.f32 256.0, %v1116_v32  ;;  %v1250_v32 = vld [vmem:[%s3236_s3] sm:$0xff] }
 0x285   : > { %v3008_v51 = vadd.f32 %v1671_v40, %v896_v47  ;;  %v1679_v57 = vpop.f32.mrb[15].mxu0 }
 0x286   : > { %v1680_v58 = vadd.f32 %v1679_v57, %v1678_v49  ;;  %v940_v13 = vmul.f32 %v936_v5, %v3006_v43  ;;  %v1119_v49 = vmul.f32 256.0, %v1115_v38  ;;  %v928_v5 = vmul.f32 256.0, %v3023_v55 }
 0x287   : > { %v939_v1 = vmul.f32 %v935_v50, %v3008_v51 }
 0x28b   : > { %v1814_v59 = vpop.f32.mrb[10].mxu1 }
 0x28c   : > { %v906_v60 = vpop.f32.mrb[11].mxu1  ;;  %v3010_v61 = vadd.f32 %v1814_v59, %v1680_v58  ;;  %v1146_v59 = vld [vmem:[%s3237_s4] sm:$0xff] }
 0x28d   : > { %v3012_v62 = vadd.f32 %v1677_v54, %v906_v60  ;;  %1861 = vmatprep.mubr.msk.f32.mxu1 %vm1148_vm9, %v1146_v59  ;;  %v1253_v59 = vld [vmem:[%s3236_s3 + $0x18] sm:$0xff] }
 0x28e   : > { %v942_v45 = vmul.f32 %v938_v33, %v3010_v61 }
 0x28f   : > { %v941_v34 = vmul.f32 %v937_v14, %v3012_v62  ;;  %v929_v14 = vmul.f32 256.0, %v3030_v9 }
 0x298   : > { %v1733_v63 = vpop.f32.mrb[16].mxu0 }
 0x299   : > { %v1734_v2 = vpop.f32.mrb[17].mxu0 }
 0x29a   : > { %v1735_v7 = vadd.f32 %v1734_v2, %v1733_v63 }
 0x29c   : > { %v1736_v10 = vpop.f32.mrb[18].mxu0  ;;  %v1010_v12 = vadd.f32 %v1735_v7, %v939_v1  ;;  %v927_v1 = vmul.f32 256.0, %v3017_v44 }
 0x29d   : > { %v1737_v48 = vpop.f32.mrb[19].mxu0 }
 0x29e   : > { %v1738_v0 = vadd.f32 %v1737_v48, %v1736_v10  ;;  %v932_v10 = vadd.f32 %v928_v5, %v3006_v43 }
 0x2a0   : > { %v1739_v24 = vpop.f32.mrb[20].mxu0  ;;  %v1015_v28 = vadd.f32 %v1738_v0, %v940_v13  ;;  %v930_v0 = vmul.f32 256.0, %v3039_v53 }
 0x2a1   : > { %v1740_v18 = vpop.f32.mrb[21].mxu0 }
 0x2a2   : > { %v1741_v26 = vadd.f32 %v1740_v18, %v1739_v24  ;;  %v933_v18 = vadd.f32 %v929_v14, %v3012_v62 }
 0x2a3   : > { %v1849_v35 = vpop.f32.mrb[12].mxu1 }
 0x2a4   : > { %v1100_v22 = vadd.f32 %v1849_v35, %v1015_v28  ;;  %v1094_v27 = vpop.f32.mrb[13].mxu1  ;;  %v1742_v30 = vpop.f32.mrb[22].mxu0  ;;  %v1020_v37 = vadd.f32 %v1741_v26, %v941_v34  ;;  %v934_v34 = vadd.f32 %v930_v0, %v3010_v61  ;;  %v1147_v35 = vld [vmem:[%s3237_s4 + $0x8] sm:$0xff] }
 0x2a5   : > { %v1095_v39 = vadd.f32 %v1094_v27, %v1010_v12  ;;  %v1743_v40 = vpop.f32.mrb[23].mxu0  ;;  %v931_v12 = vadd.f32 %v927_v1, %v3008_v51 }
 0x2a6   : > { %v1122_v41 = vadd.f32 %v1118_v29, %v1100_v22  ;;  %v1744_v42 = vadd.f32 %v1743_v40, %v1742_v30 }
 0x2a7   : > { %v1121_v46 = vadd.f32 %v1117_v36, %v1095_v39  ;;  %v1852_v52 = vpop.f32.mrb[14].mxu1 }
 0x2a8   : > { %v1025_v54 = vadd.f32 %v1744_v42, %v942_v45  ;;  %v1104_v47 = vpop.f32.mrb[15].mxu1 }
 0x2a9   : > { %v1105_v57 = vadd.f32 %v1104_v47, %v1020_v37  ;;  %v2292_v58 = vpack.i.bf16 %v1122_v41, %v1121_v46 }
 0x2aa   : > { %v1110_v60 = vadd.f32 %v1852_v52, %v1025_v54 }
 0x2ab   : > { %2293 = vrot.lane.b32.xlu0 %v2292_v58, %s2407_s9  ;;  %v1123_v63 = vadd.f32 %v1119_v49, %v1105_v57  ;;  %v1251_v57 = vld [vmem:[%s3236_s3 + $0x8] sm:$0xff]  ;;  %v1252_v58 = vld [vmem:[%s3236_s3 + $0x10] sm:$0xff] }
 0x2ac   : > { %v1124_v50 = vadd.f32 %v1120_v56, %v1110_v60  ;;  %v2408_v60 = vmov 1  }
 0x2ad   : > { %2303 = vset.pattern.permute.xlu1 %v2408_v60  ;;  %2302 = vset.pattern.permute.xlu0 %v2408_v60 }
 0x2ae   : > { %v2297_v2 = vpack.i.bf16 %v1124_v50, %v1123_v63 }
 0x2b0   : > { %2298 = vrot.lane.b32.xlu1 %v2297_v2, %s2407_s9 }
 0x31d   : > { %v2294_v7 = vpop.permute.xlu0 %2293 }
 0x31e   : > { %v2296_v48 = vunpack.i.h.bf16 %v2294_v7  ;;  %v2295_v13 = vunpack.i.l.bf16 %v2294_v7 }
 0x320   : > { %v1142_v4 = vsel %vm1141_vm10, %v931_v12, %v2295_v13  ;;  %v1143_v15 = vsel %vm1141_vm10, %v932_v10, %v2296_v48 }
 0x321   : > { %v2065_v24 = vpack.c.bf16 %v1143_v15, %v1142_v4 }
 0x322   : > { %v2299_v28 = vpop.permute.xlu1 %2298 }
 0x323   : > { %v2301_v26 = vunpack.i.h.bf16 %v2299_v28  ;;  %v2300_v43 = vunpack.i.l.bf16 %v2299_v28  ;;  %2066 = vmatprep.subr.bf16.mxu1 %v2065_v24 }
 0x324   : > { %2068 = vmatpush3.bf16.msra.mxu1 %v2065_v24 }
 0x325   : > { %v1144_v51 = vsel %vm1141_vm10, %v933_v18, %v2300_v43  ;;  %v1145_v29 = vsel %vm1141_vm10, %v934_v34, %v2301_v26 }
 0x326   : > { %v2069_v33 = vpack.c.bf16 %v1145_v29, %v1144_v51  ;;  %v2409_v51 = vmov 2  }
 0x328   : > { %2070 = vmatprep.subr.bf16.mxu1 %v2069_v33 }
 0x329   : > { %2072 = vmatpush3.bf16.msra.mxu1 %v2069_v33 }
 0x32c   : > { %1862 = vmatmul.mubr.msk.f32.vlgmr.msra.gmra.mrb[16].mxu1 %vm1148_vm9, %v1147_v35 }
 0x32d   : > { %1868 = vmatprep.mubr.msk.f32.mxu1 %vm510_vm0, %v1250_v32 }
 0x3ff   : > { %v1863_v62 = vpop.f32.mrb[16].mxu1 }
 0x400   : > { %v1231_v36 = vmul.f32 0.001953125, %v1863_v62  ;;  %v1221_v61 = vpop.f32.mrb[17].mxu1 }
 0x401   : > { %v1230_v22 = vmul.f32 0.001953125, %v1221_v61 }
 0x402   : > { %v1233_v27 = vmul.f32 %v1231_v36, %v1231_v36 }
 0x403   : > { %v1232_v30 = vmul.f32 %v1230_v22, %v1230_v22 }
 0x404   : > { %1238 = vrot.lane.b32.xlu1 %v1233_v27, %s2407_s9 }
 0x405   : > { %1236 = vrot.lane.b32.xlu0 %v1232_v30, %s2407_s9 }
 0x476   : > { %v1239_v37 = vpop.permute.xlu1 %1238 }
 0x477   : > { %v1243_v38 = vsub.f32 %v1231_v36, %v1239_v37  ;;  %v1237_v39 = vpop.permute.xlu0 %1236 }
 0x478   : > { %v1242_v40 = vsub.f32 %v1230_v22, %v1237_v39 }
 0x479   : > { %v1245_v41 = vmax.f32 %v1243_v38, 0.0 }
 0x47a   : > { %v1244_v42 = vmax.f32 %v1242_v40, 0.0 }
 0x47b   : > { %v1247_v45 = vadd.f32 1e-06, %v1245_v41 }
 0x47c   : > { %v1246_v46 = vadd.f32 1e-06, %v1244_v42 }
 0x47d   : > { %2306 = vrsqrt.f32 %v1247_v45 }
 0x47e   : > { %2308 = vrsqrt.f32 %v1246_v46 }
 0x487   : > { %v2307_v52 = vpop.eup %2306 }
 0x488   : > { %v2309_v54 = vpop.eup %2308  ;;  %v1255_v56 = vsel %vm1141_vm10, %v1231_v36, %v2307_v52 }
 0x489   : > { %v1254_v47 = vsel %vm1141_vm10, %v1230_v22, %v2309_v54 }
 0x48a   : > { %v2073_v49 = vpack.c.bf16 %v1255_v56, %v1254_v47 }
 0x48c   : > { %2074 = vmatprep.subr.bf16.mxu1 %v2073_v49 }
 0x48d   : > { %2076 = vmatpush3.bf16.msra.mxu1 %v2073_v49 }
 0x490   : > { %1869 = vmatmul.mubr.msk.f32.vlgmr.msra.gmra.mrb[18].mxu1 %vm510_vm0, %v1251_v57 }
 0x491   : > { %1871 = vmatprep.mubr.msk.f32.mxu1 %vm510_vm0, %v1252_v58 }
 0x494   : > { %1872 = vmatmul.mubr.msk.f32.gmra.mrb[20].mxu1 %vm510_vm0, %v1253_v59 }
 0x563   : > { %v1870_v50 = vpop.f32.mrb[18].mxu1 }
 0x564   : > { %v1358_v63 = vsub.f32 %v3023_v55, %v1870_v50  ;;  %v1334_v2 = vpop.f32.mrb[19].mxu1  ;;  %v1354_v48 = vmul.f32 %v1870_v50, %v3023_v55 }
 0x565   : > { %v1357_v5 = vsub.f32 %v3017_v44, %v1334_v2  ;;  %v1353_v13 = vmul.f32 %v1334_v2, %v3017_v44 }
 0x566   : > { %1367 = vrot.lane.b32.xlu1 %v1358_v63, %s2407_s9 }
 0x567   : > { %1365 = vrot.lane.b32.xlu0 %v1357_v5, %s2407_s9  ;;  %v1873_v1 = vpop.f32.mrb[20].mxu1 }
 0x568   : > { %v1360_v7 = vsub.f32 %v3039_v53, %v1873_v1  ;;  %v1344_v10 = vpop.f32.mrb[21].mxu1  ;;  %v1356_v24 = vmul.f32 %v1873_v1, %v3039_v53 }
 0x569   : > { %v1359_v12 = vsub.f32 %v3030_v9, %v1344_v10  ;;  %v1355_v28 = vmul.f32 %v1344_v10, %v3030_v9 }
 0x56a   : > { %1371 = vrot.lane.b32.xlu1 %v1360_v7, %s2407_s9 }
 0x56b   : > { %1369 = vrot.lane.b32.xlu0 %v1359_v12, %s2407_s9 }
 0x5d8   : > { %v1368_v14 = vpop.permute.xlu1 %1367 }
 0x5d9   : > { %v1378_v0 = vmul.f32 %v1368_v14, %v1354_v48  ;;  %v1366_v4 = vpop.permute.xlu0 %1365 }
 0x5da   : > { %v1377_v15 = vmul.f32 %v1366_v4, %v1353_v13 }
 0x5db   : > { %1387 = vrot.lane.b32.xlu1 %v1378_v0, %s2407_s9 }
 0x5dc   : > { %v1372_v18 = vpop.permute.xlu1 %1371  ;;  %1385 = vrot.lane.b32.xlu0 %v1377_v15, %s2407_s9 }
 0x5dd   : > { %v1380_v34 = vmul.f32 %v1372_v18, %v1356_v24  ;;  %v1370_v26 = vpop.permute.xlu0 %1369 }
 0x5de   : > { %v1379_v43 = vmul.f32 %v1370_v26, %v1355_v28 }
 0x5df   : > { %1391 = vrot.lane.b32.xlu1 %v1380_v34, %s2407_s9 }
 0x5e0   : > { %1389 = vrot.lane.b32.xlu0 %v1379_v43, %s2407_s9  ;;  %s1551_s9 = sshll.u32 %s3158_s28, 4  ;;  %s3179_s9 = int_to_ptr.vmem [resolvable:$true] %s1551_s9 }
 0x5e1   : > { %s2334_s13 = scalar_lea.vmem %s3179_s9, 1536  ;;  %p2341_p0 = scmp.lt.s32.totalorder %s3179_s9, %s2339_s15 }
 0x5e2   : > { %p2335_p11 = scmp.ne.s32.totalorder %s3179_s9, %s2334_s13  ;;  %p2342_p1 = scmp.lt.s32.totalorder %s2340_s16, %s2334_s13 }
 0x5e3   : > { %1408 = vperm.xlu1 %2303, %v1354_v48  }
 0x5e4   : > { %1403 = vperm.xlu0 %2302, %v1353_v13   ;;  %p2336_p12 = pnand %p2335_p11, %p2486_p5  ;;  %p2343_p2 = por %p2342_p1, %p2341_p0 }
 0x5e6   : > { %p2337_p13 = pneg %p2336_p12 }
 0x5e7   : > { %1413 = vperm.xlu1 %2303, %v1355_v28  }
 0x5e8   : > { %1418 = vperm.xlu0 %2302, %v1356_v24   ;;  %p2344_p3 = pnand %p2343_p2, %p2337_p13 }
 0x5eb   : > { %2304 = vset.pattern.permute.xlu1 %v2409_v51 }
 0x5ec   : > { %2305 = vset.pattern.permute.xlu0 %v2409_v51 }
 0x64d   : > { %v1388_v29 = vpop.permute.xlu1 %1387 }
 0x64e   : > { %v1398_v33 = vadd.f32 %v1388_v29, %v3023_v55  ;;  %v1386_v35 = vpop.permute.xlu0 %1385 }
 0x64f   : > { %v1397_v62 = vadd.f32 %v1386_v35, %v3017_v44 }
 0x650   : > { %1440 = vperm.xlu0 %2305, %v1398_v33  }
 0x651   : > { %1435 = vperm.xlu1 %2304, %v1397_v62   ;;  %v1392_v22 = vpop.permute.xlu1 %1391 }
 0x652   : > { %v1390_v36 = vpop.permute.xlu0 %1389  ;;  %v1400_v27 = vadd.f32 %v1392_v22, %v3039_v53 }
 0x653   : > { %v1399_v61 = vadd.f32 %v1390_v36, %v3030_v9 }
 0x655   : > { %1445 = vperm.xlu1 %2304, %v1399_v61  }
 0x659   : > { %1450 = vperm.xlu1 %2304, %v1400_v27  }
 0x662   : > { %v1409_v32 = vpop.permute.xlu1 %1408 }
 0x663   : > { %v1404_v30 = vpop.permute.xlu0 %1403  ;;  %v1424_v39 = vmul.f32 %v1409_v32, %v2923_v17  ;;  %v1425_v55 = vmul.f32 %v1409_v32, %v2925_v19  ;;  %v1426_v44 = vmul.f32 %v1409_v32, %v2944_v6 }
 0x664   : > { %v1421_v40 = vmul.f32 %v1404_v30, %v2916_v8  ;;  %v1422_v41 = vmul.f32 %v1404_v30, %v2918_v16  ;;  %v1423_v9 = vmul.f32 %v1404_v30, %v2935_v21 }
 0x666   : > { %v1414_v38 = vpop.permute.xlu1 %1413 }
 0x667   : > { %v1419_v37 = vpop.permute.xlu0 %1418  ;;  %v1427_v16 = vmul.f32 %v1414_v38, %v2931_v20  ;;  %v1428_v21 = vmul.f32 %v1414_v38, %v2933_v11  ;;  %v1429_v47 = vmul.f32 %v1414_v38, %v2957_v25 }
 0x668   : > { %v1430_v20 = vmul.f32 %v1419_v37, %v2942_v3  ;;  %v1431_v11 = vmul.f32 %v1419_v37, %v2946_v23  ;;  %v1432_v25 = vmul.f32 %v1419_v37, %v2966_v31 }
 0x6cf   : > { %v1441_v42 = vpop.permute.xlu0 %1440 }
 0x6d0   : > { %v1456_v45 = vadd.f32 %v1441_v42, %v1424_v39  ;;  %v1457_v53 = vadd.f32 %v1441_v42, %v1425_v55  ;;  %v3118_v46 = vadd.f32 %v1441_v42, %v1426_v44  ;;  %v1436_v52 = vpop.permute.xlu1 %1435 }
 0x6d1   : > { %v3120_v54 = vadd.f32 %v1436_v52, %v1421_v40  ;;  %v3122_v56 = vadd.f32 %v1436_v52, %v1422_v41  ;;  %v3124_v17 = vadd.f32 %v1436_v52, %v1423_v9 }
 0x6d2   : > { %v1468_v19 = vmul.f32 0.5, %v1456_v45  ;;  %v1469_v6 = vmul.f32 0.5, %v1457_v53  ;;  %v1470_v8 = vmul.f32 0.5, %v3118_v46 }
 0x6d3   : > { %v1465_v49 = vmul.f32 0.5, %v3120_v54  ;;  %v1466_v57 = vmul.f32 0.5, %v3122_v56  ;;  %v1467_v58 = vmul.f32 0.5, %v3124_v17 }
 0x6d4   : > { %2310 = vtanh.f32 %v1468_v19  ;;  %v1446_v59 = vpop.permute.xlu1 %1445 }
 0x6d5   : > { %2312 = vtanh.f32 %v1469_v6  ;;  %v3133_v60 = vadd.f32 %v1446_v59, %v1427_v16  ;;  %v3135_v50 = vadd.f32 %v1446_v59, %v1428_v21  ;;  %v3137_v63 = vadd.f32 %v1446_v59, %v1429_v47 }
 0x6d6   : > { %2314 = vtanh.f32 %v1470_v8 }
 0x6d7   : > { %2316 = vtanh.f32 %v1465_v49  ;;  %v1471_v2 = vmul.f32 0.5, %v3133_v60  ;;  %v1472_v5 = vmul.f32 0.5, %v3135_v50  ;;  %v1473_v1 = vmul.f32 0.5, %v3137_v63 }
 0x6d8   : > { %2318 = vtanh.f32 %v1466_v57  ;;  %v1451_v7 = vpop.permute.xlu1 %1450 }
 0x6d9   : > { %2320 = vtanh.f32 %v1467_v58  ;;  %v3145_v10 = vadd.f32 %v1451_v7, %v1430_v20  ;;  %v3147_v12 = vadd.f32 %v1451_v7, %v1431_v11  ;;  %v3149_v3 = vadd.f32 %v1451_v7, %v1432_v25 }
 0x6da   : > { %2322 = vtanh.f32 %v1471_v2 }
 0x6db   : > { %2324 = vtanh.f32 %v1472_v5  ;;  %v1474_v23 = vmul.f32 0.5, %v3145_v10  ;;  %v1475_v31 = vmul.f32 0.5, %v3147_v12  ;;  %v1476_v48 = vmul.f32 0.5, %v3149_v3 }
 0x6dc   : > { %2326 = vtanh.f32 %v1473_v1 }
 0x6dd   : > { %2328 = vtanh.f32 %v1474_v23 }
 0x6de   : > { %v2311_v13 = vpop.eup %2310  ;;  %2330 = vtanh.f32 %v1475_v31 }
 0x6df   : > { %v2313_v14 = vpop.eup %2312  ;;  %v1492_v0 = vmul.f32 0.5, %v2311_v13  ;;  %2332 = vtanh.f32 %v1476_v48 }
 0x6e0   : > { %v2315_v4 = vpop.eup %2314  ;;  %v1493_v15 = vmul.f32 0.5, %v2313_v14 }
 0x6e1   : > { %v2317_v24 = vpop.eup %2316  ;;  %v1494_v28 = vmul.f32 0.5, %v2315_v4  ;;  %v1504_v18 = vadd.f32 0.5, %v1492_v0 }
 0x6e2   : > { %v2319_v34 = vpop.eup %2318  ;;  %v1505_v26 = vadd.f32 0.5, %v1493_v15  ;;  %v1489_v43 = vmul.f32 0.5, %v2317_v24 }
 0x6e3   : > { %v2321_v51 = vpop.eup %2320  ;;  %v1506_v29 = vadd.f32 0.5, %v1494_v28  ;;  %v1516_v33 = vmul.f32 %v1504_v18, %v1456_v45  ;;  %v1490_v35 = vmul.f32 0.5, %v2319_v34 }
 0x6e4   : > { %v2323_v62 = vpop.eup %2322  ;;  %v1517_v36 = vmul.f32 %v1505_v26, %v1457_v53  ;;  %v1491_v61 = vmul.f32 0.5, %v2321_v51  ;;  %v1501_v22 = vadd.f32 0.5, %v1489_v43 }
 0x6e5   : > { %v2325_v27 = vpop.eup %2324  ;;  %v1518_v30 = vmul.f32 %v1506_v29, %v3118_v46  ;;  %1528 = vst [vmem:[%s3158_s28 + $0x18] sm:$0xff] %v1516_v33  ;;  %v1502_v32 = vadd.f32 0.5, %v1490_v35  ;;  %v1495_v37 = vmul.f32 0.5, %v2323_v62 }
 0x6e6   : > { %v2327_v38 = vpop.eup %2326  ;;  %1529 = vst [vmem:[%s3158_s28 + $0x20] sm:$0xff] %v1517_v36  ;;  %v1503_v39 = vadd.f32 0.5, %v1491_v61  ;;  %v1513_v55 = vmul.f32 %v1501_v22, %v3120_v54  ;;  %v1496_v44 = vmul.f32 0.5, %v2325_v27 }
 0x6e7   : > { %v2329_v40 = vpop.eup %2328  ;;  %1530 = vst [vmem:[%s3158_s28 + $0x28] sm:$0xff] %v1518_v30  ;;  %v1514_v41 = vmul.f32 %v1502_v32, %v3122_v56  ;;  %v1497_v9 = vmul.f32 0.5, %v2327_v38  ;;  %v1507_v42 = vadd.f32 0.5, %v1495_v37 }
 0x6e8   : > { %v2331_v45 = vpop.eup %2330  ;;  %v1515_v53 = vmul.f32 %v1503_v39, %v3124_v17  ;;  %1525 = vst [vmem:[%s3158_s28] sm:$0xff] %v1513_v55  ;;  %v1508_v46 = vadd.f32 0.5, %v1496_v44  ;;  %v1498_v52 = vmul.f32 0.5, %v2329_v40 }
 0x6e9   : > { %v2333_v19 = vpop.eup %2332  ;;  %1526 = vst [vmem:[%s3158_s28 + $0x8] sm:$0xff] %v1514_v41  ;;  %v1509_v54 = vadd.f32 0.5, %v1497_v9  ;;  %v1519_v6 = vmul.f32 %v1507_v42, %v3133_v60  ;;  %v1499_v8 = vmul.f32 0.5, %v2331_v45 }
 0x6ea   : > { %1527 = vst [vmem:[%s3158_s28 + $0x10] sm:$0xff] %v1515_v53  ;;  %v1520_v56 = vmul.f32 %v1508_v46, %v3135_v50  ;;  %v1500_v16 = vmul.f32 0.5, %v2333_v19  ;;  %v1510_v21 = vadd.f32 0.5, %v1498_v52 }
 0x6eb   : > { %v1521_v17 = vmul.f32 %v1509_v54, %v3137_v63  ;;  %1531 = vst [vmem:[%s3158_s28 + $0x30] sm:$0xff] %v1519_v6  ;;  %v1511_v47 = vadd.f32 0.5, %v1499_v8 }
 0x6ec   : > { %1532 = vst [vmem:[%s3158_s28 + $0x38] sm:$0xff] %v1520_v56  ;;  %v1512_v49 = vadd.f32 0.5, %v1500_v16  ;;  %v1522_v57 = vmul.f32 %v1510_v21, %v3145_v10 }
 0x6ed   : > { %1533 = vst [vmem:[%s3158_s28 + $0x40] sm:$0xff] %v1521_v17  ;;  %v1523_v58 = vmul.f32 %v1511_v47, %v3147_v12 }
 0x6ee   : > { %v1524_v59 = vmul.f32 %v1512_v49, %v3149_v3  ;;  %1534 = vst [vmem:[%s3158_s28 + $0x48] sm:$0xff] %v1522_v57 }
 0x6ef   : > { %1535 = vst [vmem:[%s3158_s28 + $0x50] sm:$0xff] %v1523_v58 }
 0x6f0   : > { %1536 = vst [vmem:[%s3158_s28 + $0x58] sm:$0xff] %v1524_v59 }
 0x6f1   : > { %2347 = shalt.err (!%p2344_p3)
}
 0x6f2   : > { %s2348_s17 = scalar_lea.hbm %s3186_s11, 1536  ;;  %s2352_s20 = scalar_lea.hbm %s3239_s6, 3072 }
 0x6f3   : > { %p2349_p4 = scmp.ne.s32.totalorder %s3186_s11, %s2348_s17  ;;  %p2353_p9 = scmp.lt.u32.totalorder %s3186_s11, %s3239_s6 }
 0x6f4   : > { %p2354_p10 = scmp.lt.u32.totalorder %s2352_s20, %s2348_s17  ;;  %p2356_p12 = scmp.lt.u32.totalorder %s2348_s17, %s3186_s11 }
 0x6f5   : > { %p2350_p7 = pnand %p2349_p4, %p2486_p5 }
 0x6f6   : > { %p2355_p11 = por %p2354_p10, %p2353_p9 }
 0x6f7   : > { %p2351_p8 = pneg %p2350_p7 }
 0x6f8   : > { %p2357_p13 = por %p2356_p12, %p2355_p11 }
 0x6fa   : > { %p2358_p0 = pnand %p2357_p13, %p2351_p8 }
 0x6fc   : > { %2361 = shalt.err (!%p2358_p0)
}
 0x6fd   : > { %s2411_s29 = smov 384   ;;  %s2412_s25 = smov 24  }
 0x6fe   : > { %2079 = dma.vmem_to_hbm [thread:$0]  (%p2486_p5), %s3179_s9, 1536, %s3186_s11, %s3192_s12, %s2411_s29, %s2411_s29, %s2412_s25  }
 0x6ff PF: > { %p2085_p1 = scmp.ge.s32.totalorder %s2396_s24, 2  ;;  %s1566_s10 = sand.u32 1, %s2384_s21  }
 0x700   : > { %s1567_s13 = scalar_lea.sflag [#allocation3], %s1566_s10 }
 0x701   : > { %p2082_p2 = pnand %p2085_p1, %p2490_p6 }
 0x703   : > { %2379 = dma.done.wait (!%p2082_p2), %s1567_s13, 1536  }
 0x704   : > { %2381 = vsyncadd (!%p2082_p2), %s1567_s13, 4294965760  ;;  %p16_p3 = scmp.ge.s32.totalorder %s2473_s27, 4   ;;  %s3242_s21 = smov %s2388_s22 }
 0x705   : > { %s3243_s22 = smov %s2392_s23  ;;  %s3244_s23 = smov %s2484_s30 }
 0x706   : > { %s3245_s24 = smov %s2473_s27  ;;  %18 = sbr.rel (!%p16_p3) target bundleno = 3 (0x3), region = 79 }
 0x70d   :  { %1572 = vsyncpa [#allocation3], 1 }
 0x70e   :  { %1574 = vsyncpa [#allocation3 + $0x1], 1 }

</bundles_post_ra>
